<compile_context>
chip_gen: v7x
topology: tpu7x:2x2x1
jax: 0.10.0
libtpu: 0.0.40
codegen_flags: <defaults>
</compile_context>

<pallas_src>
import functools

import jax
import jax.numpy as jnp
from jax import lax
from jax.experimental import pallas as pl
from jax.experimental.pallas import tpu as pltpu


def _mha_kernel(x_ref, wqr_ref, wkv_ref, o_ref, k_scr, v_scr, head_scr, *,
                head_num, head_dim, tq, embed, scale, compute_dtype,
                approx_recip, residual):
    """Grid = (B, S // tq): one batch element / one query tile per step."""
    qi = pl.program_id(1)
    cdt = compute_dtype
    E = embed

    # ---- K / V projection: one fused (S,E)x(E,2E) matmul per batch element,
    # ---- stored head-major so later per-head access is a leading-axis view. ----
    @pl.when(qi == 0)
    def _():
        x_all = x_ref[0]                                               # (S, E) cdt
        kv = jnp.dot(x_all, wkv_ref[...],
                     preferred_element_type=jnp.float32)               # (S, 2E) f32
        for h in range(head_num):
            lo = h * head_dim
            k_scr[h] = kv[:, lo:lo + head_dim].astype(cdt)             # (S, d)
            v_scr[h] = kv[:, E + lo:E + lo + head_dim].astype(cdt)     # (S, d)

    # ---- Fused Q (and residual) projection for this query tile. ----
    row0 = pl.multiple_of(qi * tq, tq)
    x_q = x_ref[0, pl.ds(row0, tq), :]                                 # (TQ, E) cdt
    qr = jnp.dot(x_q, wqr_ref[...], preferred_element_type=jnp.float32)
    # Fold 1/sqrt(d) and the compute-dtype cast into Q once (TQ*E elements),
    # instead of scaling every (TQ, S) score tile.
    q_full = (qr[:, :E] * scale).astype(cdt)                           # (TQ, E)

    # ---- Per-head attention; each head's result goes straight to VMEM so only
    # ---- one (TQ, S) f32 score tile is live at a time. ----
    for h in range(head_num):
        lo = h * head_dim
        q_h = q_full[:, lo:lo + head_dim]                              # (TQ, d)
        k_h = k_scr[h]                                                 # (S,  d)
        v_h = v_scr[h]                                                 # (S,  d)

        # scores = q_h @ k_h.T without materializing the transpose.
        scores = lax.dot_general(
            q_h, k_h, (((1,), (1,)), ((), ())),
            preferred_element_type=jnp.float32)                        # (TQ, S)

        # Numerically-stable softmax in f32 (v5e has no bf16 VPU/EUP path).
        m = jnp.max(scores, axis=-1, keepdims=True)
        p = jnp.exp(scores - m)
        l = jnp.sum(p, axis=-1, keepdims=True)

        # Deferred normalization: normalize the (TQ, d) output, not (TQ, S).
        o_h = jnp.dot(p.astype(cdt), v_h,
                      preferred_element_type=jnp.float32)              # (TQ, d)
        head_scr[h] = o_h * pl.reciprocal(l, approx=approx_recip)
        # TODO(synk): attention-weight dropout not implemented (p=0.0 here).

    out = jnp.concatenate([head_scr[h] for h in range(head_num)], axis=-1)
    if residual:
        out = out + qr[:, E:]                                          # x @ W_R
    # Single lane-dense full-width (TQ, E) store.
    o_ref[0] = jnp.maximum(out, 0.0).astype(o_ref.dtype)


def multi_head_attention(x, wq, wk, wv, wr, head_num, *,
                         residual=True, q_tile=None,
                         compute_dtype=jnp.bfloat16, approx_recip=None):
    """relu(multi-head attention(x) + x @ W_R), matching the PyTorch module."""
    B, S, E = x.shape
    assert E % head_num == 0, "embed_size must be divisible by head_num"
    head_dim = E // head_num

    compute_dtype = jnp.dtype(compute_dtype)
    if approx_recip is None:
        # Keep the f32 (exact) path bit-tight; use the fast EUP approx otherwise.
        approx_recip = compute_dtype != jnp.float32

    # Per-chip VMEM capacity: v5e/v6e 128 MiB, v7x 64 MiB.
    try:
        vmem_cap = int(pltpu.get_tpu_info().vmem_capacity_bytes)
    except Exception:  # pragma: no cover - conservative fallback
        vmem_cap = 128 * 1024 * 1024

    # Query-tile size: as large as the chip's VMEM comfortably allows.  Big
    # tiles amortize the ~0.35us/step grid overhead; cap at 256 on 64 MiB
    # parts (v7x) and allow 512 for long sequences on 128 MiB parts.
    if q_tile is None:
        max_tile = 512 if (vmem_cap > 96 * 1024 * 1024 and S >= 2048) else 256
        if S <= max_tile:
            q_tile = S
        else:
            q_tile = S
            for t in (512, 384, 256, 128, 64, 32, 16, 8):
                if t <= max_tile and S % t == 0:
                    q_tile = t
                    break
    assert S % q_tile == 0
    num_q_tiles = S // q_tile

    # Cast x to the compute dtype in the wrapper (halves DMA + resident block)
    # and build fused weight operands so x streams through the MXU once per
    # operand: Q||R (E, 2E) and K||V (E, 2E).
    x_c = x.astype(compute_dtype)
    wq_c = wq.astype(compute_dtype)
    if residual:
        wqr = jnp.concatenate([wq_c, wr.astype(compute_dtype)], axis=1)
    else:
        wqr = wq_c
    wkv = jnp.concatenate([wk.astype(compute_dtype),
                           wv.astype(compute_dtype)], axis=1)
    qr_cols = wqr.shape[1]

    kernel = functools.partial(
        _mha_kernel, head_num=head_num, head_dim=head_dim, tq=q_tile, embed=E,
        scale=1.0 / (head_dim ** 0.5), compute_dtype=compute_dtype,
        approx_recip=bool(approx_recip), residual=residual)

    # Advisory cost estimate for the XLA scheduler.
    flops = 2 * B * S * E * (qr_cols + 2 * E) + 4 * B * S * S * E
    transcendentals = B * head_num * S * S
    bytes_accessed = (B * S * E * compute_dtype.itemsize          # x (bf16)
                      + (E * qr_cols + 2 * E * E) * compute_dtype.itemsize
                      + B * S * E * x.dtype.itemsize)             # output

    c_b = compute_dtype.itemsize
    out_b = x.dtype.itemsize

    def build(single_buffer_weights, weight_bufs):
        if single_buffer_weights:
            # Constant-index weight blocks never need double-buffering.
            def w_spec(cols):
                return pl.BlockSpec((E, cols), lambda b, qi: (0, 0),
                                    pipeline_mode=pl.Buffered(1))
        else:
            def w_spec(cols):
                return pl.BlockSpec((E, cols), lambda b, qi: (0, 0))

        # Per-step VMEM need: blocks (double-buffered), scratch, and the live
        # f32 intermediates (KV projection, QR projection, score/exp tiles).
        vmem_need = (
            2 * S * E * c_b                                   # x block
            + weight_bufs * (E * qr_cols + 2 * E * E) * c_b   # weight blocks
            + 2 * q_tile * E * out_b                          # output block
            + 2 * head_num * S * head_dim * c_b               # K / V scratch
            + head_num * q_tile * head_dim * 4                # head-output slab
            + 2 * S * E * 4                                   # f32 KV projection
            + q_tile * (qr_cols + 2 * E) * 4                  # qr / q_full / res
            + 3 * q_tile * S * 4)                             # live score tiles
        vmem_limit = int(min(max(int(vmem_need * 1.5), 32 * 1024 * 1024),
                             vmem_cap - 8 * 1024 * 1024))

        return pl.pallas_call(
            kernel,
            out_shape=jax.ShapeDtypeStruct((B, S, E), x.dtype),
            grid=(B, num_q_tiles),
            in_specs=[
                # Full sequence of one batch element; index constant in qi so
                # the block stays VMEM-resident across query tiles (no re-DMA).
                pl.BlockSpec((1, S, E), lambda b, qi: (b, 0, 0)),
                w_spec(qr_cols),     # W_Q || W_R (resident)
                w_spec(2 * E),       # W_K || W_V (resident)
            ],
            out_specs=pl.BlockSpec((1, q_tile, E), lambda b, qi: (b, qi, 0)),
            scratch_shapes=[
                pltpu.VMEM((head_num, S, head_dim), compute_dtype),  # K per head
                pltpu.VMEM((head_num, S, head_dim), compute_dtype),  # V per head
                pltpu.VMEM((head_num, q_tile, head_dim), jnp.float32),  # head outs
            ],
            compiler_params=pltpu.CompilerParams(
                # B is parallel (sharded across TCs on v7x); the query-tile
                # axis is arbitrary because K/V scratch is reused across it.
                dimension_semantics=("parallel", "arbitrary"),
                vmem_limit_bytes=vmem_limit,
            ),
            cost_estimate=pl.CostEstimate(flops=flops,
                                          transcendentals=transcendentals,
                                          bytes_accessed=bytes_accessed),
        )

    try:
        out = build(True, 1)(x_c, wqr, wkv)
        return jax.block_until_ready(out)
    except Exception:
        # pipeline_mode=pl.Buffered(1) not supported on this jax/libtpu combo:
        # fall back to default double-buffered weight blocks (known-good path).
        return build(False, 2)(x_c, wqr, wkv)


def _xavier_uniform(key, shape, dtype=jnp.float32):
    fan_in, fan_out = shape
    limit = (6.0 / (fan_in + fan_out)) ** 0.5
    return jax.random.uniform(key, shape, dtype, minval=-limit, maxval=limit)


def _ref_mha(x, wq, wk, wv, wr, head_num):
    """Pure-JAX reference mirroring the PyTorch forward exactly."""
    B, S, E = x.shape
    d = E // head_num
    Q = x @ wq
    K = x @ wk
    V = x @ wv
    Qh = Q.reshape(B, S, head_num, d).transpose(2, 0, 1, 3)
    Kh = K.reshape(B, S, head_num, d).transpose(2, 0, 1, 3)
    Vh = V.reshape(B, S, head_num, d).transpose(2, 0, 1, 3)
    inner = jnp.einsum("hbsd,hbtd->hbst", Qh, Kh) / (d ** 0.5)
    attn = jax.nn.softmax(inner, axis=-1)
    res = jnp.einsum("hbst,hbtd->hbsd", attn, Vh)
    res = res.transpose(1, 2, 0, 3).reshape(B, S, E)
    res = res + x @ wr
    return jnp.maximum(res, 0.0)


if __name__ == "__main__":
    # Small, module-consistent shapes.
    B, S = 2, 8
    embed_size, head_num = 32, 4
    dropout = 0.0  # dropout disabled for determinism

    key = jax.random.PRNGKey(0)
    kx, kq, kk, kv, kr = jax.random.split(key, 5)
    x = jax.random.normal(kx, (B, S, embed_size), jnp.float32)
    W_Q = _xavier_uniform(kq, (embed_size, embed_size))
    W_K = _xavier_uniform(kk, (embed_size, embed_size))
    W_V = _xavier_uniform(kv, (embed_size, embed_size))
    W_R = _xavier_uniform(kr, (embed_size, embed_size))

    ref = _ref_mha(x, W_Q, W_K, W_V, W_R, head_num)

    # Exact path (f32 MXU operands): tight functional check of the kernel logic.
    out_f32 = multi_head_attention(x, W_Q, W_K, W_V, W_R, head_num,
                                   compute_dtype=jnp.float32)
    out_f32 = jax.block_until_ready(out_f32)
    if not jnp.allclose(out_f32, ref, atol=1e-5, rtol=1e-5):
        raise AssertionError("Pallas kernel (f32 path) mismatch vs reference")

    # Fast path (bf16 x/weights on the MXU, f32 accumulation): default config.
    out_bf16 = multi_head_attention(x, W_Q, W_K, W_V, W_R, head_num)
    out_bf16 = jax.block_until_ready(out_bf16)
    if not jnp.allclose(out_bf16, ref, atol=1e-1, rtol=5e-2):
        raise AssertionError("Pallas kernel (bf16 path) mismatch vs reference")

    print("KERNEL_OK")
</pallas_src>

<mosaic_0001>
module attributes {stable_mosaic.version = 11 : i64} {
  func.func @_mha_kernel(%arg0: i32, %arg1: i32, %arg2: memref<1x8x32xf32, #tpu.memory_space<vmem>>, %arg3: memref<32x64xf32, #tpu.memory_space<vmem>>, %arg4: memref<32x64xf32, #tpu.memory_space<vmem>>, %arg5: memref<1x8x32xf32, #tpu.memory_space<vmem>>, %arg6: memref<4x8x8xf32, #tpu.memory_space<vmem>>, %arg7: memref<4x8x8xf32, #tpu.memory_space<vmem>>, %arg8: memref<4x8x8xf32, #tpu.memory_space<vmem>>) attributes {dimension_semantics = [#tpu.dimension_semantics<parallel>, #tpu.dimension_semantics<arbitrary>], iteration_bounds = array<i64: 2, 1>, scalar_prefetch = 0 : i64, scratch_operands = 3 : i64, tpu.core_type = #tpu.core_type<tc>, window_params = [{transform_indices = @transform_0, window_bounds = array<i64: 1, 8, 32>}, {pipeline_mode = #tpu.pipeline_mode<synchronous>, transform_indices = @transform_1, window_bounds = array<i64: 32, 64>}, {pipeline_mode = #tpu.pipeline_mode<synchronous>, transform_indices = @transform_2, window_bounds = array<i64: 32, 64>}, {transform_indices = @transform_3, window_bounds = array<i64: 1, 8, 32>}]} {
    %c0_i32 = arith.constant 0 : i32
    %0 = arith.cmpi eq, %arg1, %c0_i32 : i32
    %1 = arith.extui %0 : i1 to i32
    %c0_i32_0 = arith.constant 0 : i32
    %2 = arith.cmpi ne, %1, %c0_i32_0 : i32
    scf.if %2 {
      %c0_70 = arith.constant 0 : index
      %c0_71 = arith.constant 0 : index
      %c0_72 = arith.constant 0 : index
      %109 = vector.load %arg2[%c0_70, %c0_71, %c0_72] : memref<1x8x32xf32, #tpu.memory_space<vmem>>, vector<1x8x32xf32>
      %110 = vector.shape_cast %109 : vector<1x8x32xf32> to vector<8x32xf32>
      %c0_73 = arith.constant 0 : index
      %c0_74 = arith.constant 0 : index
      %111 = vector.load %arg4[%c0_73, %c0_74] : memref<32x64xf32, #tpu.memory_space<vmem>>, vector<32x64xf32>
      %cst_75 = arith.constant dense<0.000000e+00> : vector<8x64xf32>
      %112 = tpu.matmul %110, %111, %cst_75 {dimension_numbers = #tpu.dot_dimension_numbers<[1], [0], [0], [1], [0, 0, 1, 1], [], []>} : vector<8x32xf32>, vector<32x64xf32>, vector<8x64xf32> -> vector<8x64xf32>
      %113 = vector.extract_strided_slice %112 {offsets = [0, 0], sizes = [8, 8], strides = [1, 1]} : vector<8x64xf32> to vector<8x8xf32>
      %c0_76 = arith.constant 0 : index
      %c0_77 = arith.constant 0 : index
      %c0_78 = arith.constant 0 : index
      %114 = vector.load %arg6[%c0_76, %c0_77, %c0_78] : memref<4x8x8xf32, #tpu.memory_space<vmem>>, vector<1x8x8xf32>
      %115 = vector.shape_cast %114 : vector<1x8x8xf32> to vector<8x8xf32>
      %116 = vector.shape_cast %113 : vector<8x8xf32> to vector<1x8x8xf32>
      tpu.vector_store %arg6[%c0_76, %c0_77, %c0_78], %116 {strides = array<i32>} : memref<4x8x8xf32, #tpu.memory_space<vmem>>, vector<1x8x8xf32>,
      %117 = vector.extract_strided_slice %112 {offsets = [0, 32], sizes = [8, 8], strides = [1, 1]} : vector<8x64xf32> to vector<8x8xf32>
      %c0_79 = arith.constant 0 : index
      %c0_80 = arith.constant 0 : index
      %c0_81 = arith.constant 0 : index
      %118 = vector.load %arg7[%c0_79, %c0_80, %c0_81] : memref<4x8x8xf32, #tpu.memory_space<vmem>>, vector<1x8x8xf32>
      %119 = vector.shape_cast %118 : vector<1x8x8xf32> to vector<8x8xf32>
      %120 = vector.shape_cast %117 : vector<8x8xf32> to vector<1x8x8xf32>
      tpu.vector_store %arg7[%c0_79, %c0_80, %c0_81], %120 {strides = array<i32>} : memref<4x8x8xf32, #tpu.memory_space<vmem>>, vector<1x8x8xf32>,
      %121 = vector.extract_strided_slice %112 {offsets = [0, 8], sizes = [8, 8], strides = [1, 1]} : vector<8x64xf32> to vector<8x8xf32>
      %c1_82 = arith.constant 1 : index
      %c0_83 = arith.constant 0 : index
      %c0_84 = arith.constant 0 : index
      %122 = vector.load %arg6[%c1_82, %c0_83, %c0_84] : memref<4x8x8xf32, #tpu.memory_space<vmem>>, vector<1x8x8xf32>
      %123 = vector.shape_cast %122 : vector<1x8x8xf32> to vector<8x8xf32>
      %124 = vector.shape_cast %121 : vector<8x8xf32> to vector<1x8x8xf32>
      tpu.vector_store %arg6[%c1_82, %c0_83, %c0_84], %124 {strides = array<i32>} : memref<4x8x8xf32, #tpu.memory_space<vmem>>, vector<1x8x8xf32>,
      %125 = vector.extract_strided_slice %112 {offsets = [0, 40], sizes = [8, 8], strides = [1, 1]} : vector<8x64xf32> to vector<8x8xf32>
      %c1_85 = arith.constant 1 : index
      %c0_86 = arith.constant 0 : index
      %c0_87 = arith.constant 0 : index
      %126 = vector.load %arg7[%c1_85, %c0_86, %c0_87] : memref<4x8x8xf32, #tpu.memory_space<vmem>>, vector<1x8x8xf32>
      %127 = vector.shape_cast %126 : vector<1x8x8xf32> to vector<8x8xf32>
      %128 = vector.shape_cast %125 : vector<8x8xf32> to vector<1x8x8xf32>
      tpu.vector_store %arg7[%c1_85, %c0_86, %c0_87], %128 {strides = array<i32>} : memref<4x8x8xf32, #tpu.memory_space<vmem>>, vector<1x8x8xf32>,
      %129 = vector.extract_strided_slice %112 {offsets = [0, 16], sizes = [8, 8], strides = [1, 1]} : vector<8x64xf32> to vector<8x8xf32>
      %c2_88 = arith.constant 2 : index
      %c0_89 = arith.constant 0 : index
      %c0_90 = arith.constant 0 : index
      %130 = vector.load %arg6[%c2_88, %c0_89, %c0_90] : memref<4x8x8xf32, #tpu.memory_space<vmem>>, vector<1x8x8xf32>
      %131 = vector.shape_cast %130 : vector<1x8x8xf32> to vector<8x8xf32>
      %132 = vector.shape_cast %129 : vector<8x8xf32> to vector<1x8x8xf32>
      tpu.vector_store %arg6[%c2_88, %c0_89, %c0_90], %132 {strides = array<i32>} : memref<4x8x8xf32, #tpu.memory_space<vmem>>, vector<1x8x8xf32>,
      %133 = vector.extract_strided_slice %112 {offsets = [0, 48], sizes = [8, 8], strides = [1, 1]} : vector<8x64xf32> to vector<8x8xf32>
      %c2_91 = arith.constant 2 : index
      %c0_92 = arith.constant 0 : index
      %c0_93 = arith.constant 0 : index
      %134 = vector.load %arg7[%c2_91, %c0_92, %c0_93] : memref<4x8x8xf32, #tpu.memory_space<vmem>>, vector<1x8x8xf32>
      %135 = vector.shape_cast %134 : vector<1x8x8xf32> to vector<8x8xf32>
      %136 = vector.shape_cast %133 : vector<8x8xf32> to vector<1x8x8xf32>
      tpu.vector_store %arg7[%c2_91, %c0_92, %c0_93], %136 {strides = array<i32>} : memref<4x8x8xf32, #tpu.memory_space<vmem>>, vector<1x8x8xf32>,
      %137 = vector.extract_strided_slice %112 {offsets = [0, 24], sizes = [8, 8], strides = [1, 1]} : vector<8x64xf32> to vector<8x8xf32>
      %c3_94 = arith.constant 3 : index
      %c0_95 = arith.constant 0 : index
      %c0_96 = arith.constant 0 : index
      %138 = vector.load %arg6[%c3_94, %c0_95, %c0_96] : memref<4x8x8xf32, #tpu.memory_space<vmem>>, vector<1x8x8xf32>
      %139 = vector.shape_cast %138 : vector<1x8x8xf32> to vector<8x8xf32>
      %140 = vector.shape_cast %137 : vector<8x8xf32> to vector<1x8x8xf32>
      tpu.vector_store %arg6[%c3_94, %c0_95, %c0_96], %140 {strides = array<i32>} : memref<4x8x8xf32, #tpu.memory_space<vmem>>, vector<1x8x8xf32>,
      %141 = vector.extract_strided_slice %112 {offsets = [0, 56], sizes = [8, 8], strides = [1, 1]} : vector<8x64xf32> to vector<8x8xf32>
      %c3_97 = arith.constant 3 : index
      %c0_98 = arith.constant 0 : index
      %c0_99 = arith.constant 0 : index
      %142 = vector.load %arg7[%c3_97, %c0_98, %c0_99] : memref<4x8x8xf32, #tpu.memory_space<vmem>>, vector<1x8x8xf32>
      %143 = vector.shape_cast %142 : vector<1x8x8xf32> to vector<8x8xf32>
      %144 = vector.shape_cast %141 : vector<8x8xf32> to vector<1x8x8xf32>
      tpu.vector_store %arg7[%c3_97, %c0_98, %c0_99], %144 {strides = array<i32>} : memref<4x8x8xf32, #tpu.memory_space<vmem>>, vector<1x8x8xf32>,
    } else {
    }
    %c8_i32 = arith.constant 8 : i32
    %3 = arith.muli %arg1, %c8_i32 : i32
    %4 = tpu.assume_multiple %3, 8 : i32
    %c0 = arith.constant 0 : index
    %5 = arith.index_cast %4 : i32 to index
    %c0_1 = arith.constant 0 : index
    %6 = vector.load %arg2[%c0, %5, %c0_1] : memref<1x8x32xf32, #tpu.memory_space<vmem>>, vector<1x8x32xf32>
    %7 = vector.shape_cast %6 : vector<1x8x32xf32> to vector<8x32xf32>
    %c0_2 = arith.constant 0 : index
    %c0_3 = arith.constant 0 : index
    %8 = vector.load %arg3[%c0_2, %c0_3] : memref<32x64xf32, #tpu.memory_space<vmem>>, vector<32x64xf32>
    %cst = arith.constant dense<0.000000e+00> : vector<8x64xf32>
    %9 = tpu.matmul %7, %8, %cst {dimension_numbers = #tpu.dot_dimension_numbers<[1], [0], [0], [1], [0, 0, 1, 1], [], []>} : vector<8x32xf32>, vector<32x64xf32>, vector<8x64xf32> -> vector<8x64xf32>
    %10 = vector.extract_strided_slice %9 {offsets = [0, 0], sizes = [8, 32], strides = [1, 1]} : vector<8x64xf32> to vector<8x32xf32>
    %cst_4 = arith.constant 0.353553385 : f32
    %11 = vector.broadcast %cst_4 : f32 to vector<8x32xf32>
    %12 = arith.mulf %10, %11 : vector<8x32xf32>
    %13 = vector.extract_strided_slice %12 {offsets = [0, 0], sizes = [8, 8], strides = [1, 1]} : vector<8x32xf32> to vector<8x8xf32>
    %c0_5 = arith.constant 0 : index
    %c0_6 = arith.constant 0 : index
    %c0_7 = arith.constant 0 : index
    %14 = vector.load %arg6[%c0_5, %c0_6, %c0_7] : memref<4x8x8xf32, #tpu.memory_space<vmem>>, vector<1x8x8xf32>
    %15 = vector.shape_cast %14 : vector<1x8x8xf32> to vector<8x8xf32>
    %c0_8 = arith.constant 0 : index
    %c0_9 = arith.constant 0 : index
    %c0_10 = arith.constant 0 : index
    %16 = vector.load %arg7[%c0_8, %c0_9, %c0_10] : memref<4x8x8xf32, #tpu.memory_space<vmem>>, vector<1x8x8xf32>
    %17 = vector.shape_cast %16 : vector<1x8x8xf32> to vector<8x8xf32>
    %cst_11 = arith.constant dense<0.000000e+00> : vector<8x8xf32>
    %18 = tpu.matmul %13, %15, %cst_11 {dimension_numbers = #tpu.dot_dimension_numbers<[1], [1], [0], [0], [0, 0, 1, 0], [], []>} : vector<8x8xf32>, vector<8x8xf32>, vector<8x8xf32> -> vector<8x8xf32>
    %cst_12 = arith.constant dense<0xFF800000> : vector<8xf32>
    %19 = vector.multi_reduction <maximumf>, %18, %cst_12 [1] : vector<8x8xf32> to vector<8xf32>
    %20 = vector.shape_cast %19 : vector<8xf32> to vector<8x1xf32>
    %21 = vector.broadcast %20 : vector<8x1xf32> to vector<8x8xf32>
    %22 = arith.subf %18, %21 : vector<8x8xf32>
    %23 = math.exp %22 : vector<8x8xf32>
    %cst_13 = arith.constant dense<0.000000e+00> : vector<8xf32>
    %24 = vector.multi_reduction <add>, %23, %cst_13 [1] : vector<8x8xf32> to vector<8xf32>
    %25 = vector.shape_cast %24 : vector<8xf32> to vector<8x1xf32>
    %cst_14 = arith.constant dense<0.000000e+00> : vector<8x8xf32>
    %26 = tpu.matmul %23, %17, %cst_14 {dimension_numbers = #tpu.dot_dimension_numbers<[1], [0], [0], [1], [0, 0, 1, 1], [], []>} : vector<8x8xf32>, vector<8x8xf32>, vector<8x8xf32> -> vector<8x8xf32>
    %27 = tpu.reciprocal %25 : vector<8x1xf32> -> vector<8x1xf32>
    %28 = vector.broadcast %27 : vector<8x1xf32> to vector<8x8xf32>
    %29 = arith.mulf %26, %28 : vector<8x8xf32>
    %c0_15 = arith.constant 0 : index
    %c0_16 = arith.constant 0 : index
    %c0_17 = arith.constant 0 : index
    %30 = vector.load %arg8[%c0_15, %c0_16, %c0_17] : memref<4x8x8xf32, #tpu.memory_space<vmem>>, vector<1x8x8xf32>
    %31 = vector.shape_cast %30 : vector<1x8x8xf32> to vector<8x8xf32>
    %32 = vector.shape_cast %29 : vector<8x8xf32> to vector<1x8x8xf32>
    tpu.vector_store %arg8[%c0_15, %c0_16, %c0_17], %32 {strides = array<i32>} : memref<4x8x8xf32, #tpu.memory_space<vmem>>, vector<1x8x8xf32>,
    %33 = vector.extract_strided_slice %12 {offsets = [0, 8], sizes = [8, 8], strides = [1, 1]} : vector<8x32xf32> to vector<8x8xf32>
    %c1 = arith.constant 1 : index
    %c0_18 = arith.constant 0 : index
    %c0_19 = arith.constant 0 : index
    %34 = vector.load %arg6[%c1, %c0_18, %c0_19] : memref<4x8x8xf32, #tpu.memory_space<vmem>>, vector<1x8x8xf32>
    %35 = vector.shape_cast %34 : vector<1x8x8xf32> to vector<8x8xf32>
    %c1_20 = arith.constant 1 : index
    %c0_21 = arith.constant 0 : index
    %c0_22 = arith.constant 0 : index
    %36 = vector.load %arg7[%c1_20, %c0_21, %c0_22] : memref<4x8x8xf32, #tpu.memory_space<vmem>>, vector<1x8x8xf32>
    %37 = vector.shape_cast %36 : vector<1x8x8xf32> to vector<8x8xf32>
    %cst_23 = arith.constant dense<0.000000e+00> : vector<8x8xf32>
    %38 = tpu.matmul %33, %35, %cst_23 {dimension_numbers = #tpu.dot_dimension_numbers<[1], [1], [0], [0], [0, 0, 1, 0], [], []>} : vector<8x8xf32>, vector<8x8xf32>, vector<8x8xf32> -> vector<8x8xf32>
    %cst_24 = arith.constant dense<0xFF800000> : vector<8xf32>
    %39 = vector.multi_reduction <maximumf>, %38, %cst_24 [1] : vector<8x8xf32> to vector<8xf32>
    %40 = vector.shape_cast %39 : vector<8xf32> to vector<8x1xf32>
    %41 = vector.broadcast %40 : vector<8x1xf32> to vector<8x8xf32>
    %42 = arith.subf %38, %41 : vector<8x8xf32>
    %43 = math.exp %42 : vector<8x8xf32>
    %cst_25 = arith.constant dense<0.000000e+00> : vector<8xf32>
    %44 = vector.multi_reduction <add>, %43, %cst_25 [1] : vector<8x8xf32> to vector<8xf32>
    %45 = vector.shape_cast %44 : vector<8xf32> to vector<8x1xf32>
    %cst_26 = arith.constant dense<0.000000e+00> : vector<8x8xf32>
    %46 = tpu.matmul %43, %37, %cst_26 {dimension_numbers = #tpu.dot_dimension_numbers<[1], [0], [0], [1], [0, 0, 1, 1], [], []>} : vector<8x8xf32>, vector<8x8xf32>, vector<8x8xf32> -> vector<8x8xf32>
    %47 = tpu.reciprocal %45 : vector<8x1xf32> -> vector<8x1xf32>
    %48 = vector.broadcast %47 : vector<8x1xf32> to vector<8x8xf32>
    %49 = arith.mulf %46, %48 : vector<8x8xf32>
    %c1_27 = arith.constant 1 : index
    %c0_28 = arith.constant 0 : index
    %c0_29 = arith.constant 0 : index
    %50 = vector.load %arg8[%c1_27, %c0_28, %c0_29] : memref<4x8x8xf32, #tpu.memory_space<vmem>>, vector<1x8x8xf32>
    %51 = vector.shape_cast %50 : vector<1x8x8xf32> to vector<8x8xf32>
    %52 = vector.shape_cast %49 : vector<8x8xf32> to vector<1x8x8xf32>
    tpu.vector_store %arg8[%c1_27, %c0_28, %c0_29], %52 {strides = array<i32>} : memref<4x8x8xf32, #tpu.memory_space<vmem>>, vector<1x8x8xf32>,
    %53 = vector.extract_strided_slice %12 {offsets = [0, 16], sizes = [8, 8], strides = [1, 1]} : vector<8x32xf32> to vector<8x8xf32>
    %c2 = arith.constant 2 : index
    %c0_30 = arith.constant 0 : index
    %c0_31 = arith.constant 0 : index
    %54 = vector.load %arg6[%c2, %c0_30, %c0_31] : memref<4x8x8xf32, #tpu.memory_space<vmem>>, vector<1x8x8xf32>
    %55 = vector.shape_cast %54 : vector<1x8x8xf32> to vector<8x8xf32>
    %c2_32 = arith.constant 2 : index
    %c0_33 = arith.constant 0 : index
    %c0_34 = arith.constant 0 : index
    %56 = vector.load %arg7[%c2_32, %c0_33, %c0_34] : memref<4x8x8xf32, #tpu.memory_space<vmem>>, vector<1x8x8xf32>
    %57 = vector.shape_cast %56 : vector<1x8x8xf32> to vector<8x8xf32>
    %cst_35 = arith.constant dense<0.000000e+00> : vector<8x8xf32>
    %58 = tpu.matmul %53, %55, %cst_35 {dimension_numbers = #tpu.dot_dimension_numbers<[1], [1], [0], [0], [0, 0, 1, 0], [], []>} : vector<8x8xf32>, vector<8x8xf32>, vector<8x8xf32> -> vector<8x8xf32>
    %cst_36 = arith.constant dense<0xFF800000> : vector<8xf32>
    %59 = vector.multi_reduction <maximumf>, %58, %cst_36 [1] : vector<8x8xf32> to vector<8xf32>
    %60 = vector.shape_cast %59 : vector<8xf32> to vector<8x1xf32>
    %61 = vector.broadcast %60 : vector<8x1xf32> to vector<8x8xf32>
    %62 = arith.subf %58, %61 : vector<8x8xf32>
    %63 = math.exp %62 : vector<8x8xf32>
    %cst_37 = arith.constant dense<0.000000e+00> : vector<8xf32>
    %64 = vector.multi_reduction <add>, %63, %cst_37 [1] : vector<8x8xf32> to vector<8xf32>
    %65 = vector.shape_cast %64 : vector<8xf32> to vector<8x1xf32>
    %cst_38 = arith.constant dense<0.000000e+00> : vector<8x8xf32>
    %66 = tpu.matmul %63, %57, %cst_38 {dimension_numbers = #tpu.dot_dimension_numbers<[1], [0], [0], [1], [0, 0, 1, 1], [], []>} : vector<8x8xf32>, vector<8x8xf32>, vector<8x8xf32> -> vector<8x8xf32>
    %67 = tpu.reciprocal %65 : vector<8x1xf32> -> vector<8x1xf32>
    %68 = vector.broadcast %67 : vector<8x1xf32> to vector<8x8xf32>
    %69 = arith.mulf %66, %68 : vector<8x8xf32>
    %c2_39 = arith.constant 2 : index
    %c0_40 = arith.constant 0 : index
    %c0_41 = arith.constant 0 : index
    %70 = vector.load %arg8[%c2_39, %c0_40, %c0_41] : memref<4x8x8xf32, #tpu.memory_space<vmem>>, vector<1x8x8xf32>
    %71 = vector.shape_cast %70 : vector<1x8x8xf32> to vector<8x8xf32>
    %72 = vector.shape_cast %69 : vector<8x8xf32> to vector<1x8x8xf32>
    tpu.vector_store %arg8[%c2_39, %c0_40, %c0_41], %72 {strides = array<i32>} : memref<4x8x8xf32, #tpu.memory_space<vmem>>, vector<1x8x8xf32>,
    %73 = vector.extract_strided_slice %12 {offsets = [0, 24], sizes = [8, 8], strides = [1, 1]} : vector<8x32xf32> to vector<8x8xf32>
    %c3 = arith.constant 3 : index
    %c0_42 = arith.constant 0 : index
    %c0_43 = arith.constant 0 : index
    %74 = vector.load %arg6[%c3, %c0_42, %c0_43] : memref<4x8x8xf32, #tpu.memory_space<vmem>>, vector<1x8x8xf32>
    %75 = vector.shape_cast %74 : vector<1x8x8xf32> to vector<8x8xf32>
    %c3_44 = arith.constant 3 : index
    %c0_45 = arith.constant 0 : index
    %c0_46 = arith.constant 0 : index
    %76 = vector.load %arg7[%c3_44, %c0_45, %c0_46] : memref<4x8x8xf32, #tpu.memory_space<vmem>>, vector<1x8x8xf32>
    %77 = vector.shape_cast %76 : vector<1x8x8xf32> to vector<8x8xf32>
    %cst_47 = arith.constant dense<0.000000e+00> : vector<8x8xf32>
    %78 = tpu.matmul %73, %75, %cst_47 {dimension_numbers = #tpu.dot_dimension_numbers<[1], [1], [0], [0], [0, 0, 1, 0], [], []>} : vector<8x8xf32>, vector<8x8xf32>, vector<8x8xf32> -> vector<8x8xf32>
    %cst_48 = arith.constant dense<0xFF800000> : vector<8xf32>
    %79 = vector.multi_reduction <maximumf>, %78, %cst_48 [1] : vector<8x8xf32> to vector<8xf32>
    %80 = vector.shape_cast %79 : vector<8xf32> to vector<8x1xf32>
    %81 = vector.broadcast %80 : vector<8x1xf32> to vector<8x8xf32>
    %82 = arith.subf %78, %81 : vector<8x8xf32>
    %83 = math.exp %82 : vector<8x8xf32>
    %cst_49 = arith.constant dense<0.000000e+00> : vector<8xf32>
    %84 = vector.multi_reduction <add>, %83, %cst_49 [1] : vector<8x8xf32> to vector<8xf32>
    %85 = vector.shape_cast %84 : vector<8xf32> to vector<8x1xf32>
    %cst_50 = arith.constant dense<0.000000e+00> : vector<8x8xf32>
    %86 = tpu.matmul %83, %77, %cst_50 {dimension_numbers = #tpu.dot_dimension_numbers<[1], [0], [0], [1], [0, 0, 1, 1], [], []>} : vector<8x8xf32>, vector<8x8xf32>, vector<8x8xf32> -> vector<8x8xf32>
    %87 = tpu.reciprocal %85 : vector<8x1xf32> -> vector<8x1xf32>
    %88 = vector.broadcast %87 : vector<8x1xf32> to vector<8x8xf32>
    %89 = arith.mulf %86, %88 : vector<8x8xf32>
    %c3_51 = arith.constant 3 : index
    %c0_52 = arith.constant 0 : index
    %c0_53 = arith.constant 0 : index
    %90 = vector.load %arg8[%c3_51, %c0_52, %c0_53] : memref<4x8x8xf32, #tpu.memory_space<vmem>>, vector<1x8x8xf32>
    %91 = vector.shape_cast %90 : vector<1x8x8xf32> to vector<8x8xf32>
    %92 = vector.shape_cast %89 : vector<8x8xf32> to vector<1x8x8xf32>
    tpu.vector_store %arg8[%c3_51, %c0_52, %c0_53], %92 {strides = array<i32>} : memref<4x8x8xf32, #tpu.memory_space<vmem>>, vector<1x8x8xf32>,
    %c0_54 = arith.constant 0 : index
    %c0_55 = arith.constant 0 : index
    %c0_56 = arith.constant 0 : index
    %93 = vector.load %arg8[%c0_54, %c0_55, %c0_56] : memref<4x8x8xf32, #tpu.memory_space<vmem>>, vector<1x8x8xf32>
    %94 = vector.shape_cast %93 : vector<1x8x8xf32> to vector<8x8xf32>
    %c1_57 = arith.constant 1 : index
    %c0_58 = arith.constant 0 : index
    %c0_59 = arith.constant 0 : index
    %95 = vector.load %arg8[%c1_57, %c0_58, %c0_59] : memref<4x8x8xf32, #tpu.memory_space<vmem>>, vector<1x8x8xf32>
    %96 = vector.shape_cast %95 : vector<1x8x8xf32> to vector<8x8xf32>
    %c2_60 = arith.constant 2 : index
    %c0_61 = arith.constant 0 : index
    %c0_62 = arith.constant 0 : index
    %97 = vector.load %arg8[%c2_60, %c0_61, %c0_62] : memref<4x8x8xf32, #tpu.memory_space<vmem>>, vector<1x8x8xf32>
    %98 = vector.shape_cast %97 : vector<1x8x8xf32> to vector<8x8xf32>
    %c3_63 = arith.constant 3 : index
    %c0_64 = arith.constant 0 : index
    %c0_65 = arith.constant 0 : index
    %99 = vector.load %arg8[%c3_63, %c0_64, %c0_65] : memref<4x8x8xf32, #tpu.memory_space<vmem>>, vector<1x8x8xf32>
    %100 = vector.shape_cast %99 : vector<1x8x8xf32> to vector<8x8xf32>
    %101 = tpu.concatenate %94, %96, %98, %100 in 1 : vector<8x8xf32>, vector<8x8xf32>, vector<8x8xf32>, vector<8x8xf32> -> vector<8x32xf32>
    %102 = vector.extract_strided_slice %9 {offsets = [0, 32], sizes = [8, 32], strides = [1, 1]} : vector<8x64xf32> to vector<8x32xf32>
    %103 = arith.addf %101, %102 : vector<8x32xf32>
    %cst_66 = arith.constant 0.000000e+00 : f32
    %104 = vector.broadcast %cst_66 : f32 to vector<8x32xf32>
    %105 = arith.maximumf %103, %104 : vector<8x32xf32>
    %c0_67 = arith.constant 0 : index
    %c0_68 = arith.constant 0 : index
    %c0_69 = arith.constant 0 : index
    %106 = vector.load %arg5[%c0_67, %c0_68, %c0_69] : memref<1x8x32xf32, #tpu.memory_space<vmem>>, vector<1x8x32xf32>
    %107 = vector.shape_cast %106 : vector<1x8x32xf32> to vector<8x32xf32>
    %108 = vector.shape_cast %105 : vector<8x32xf32> to vector<1x8x32xf32>
    tpu.vector_store %arg5[%c0_67, %c0_68, %c0_69], %108 {strides = array<i32>} : memref<1x8x32xf32, #tpu.memory_space<vmem>>, vector<1x8x32xf32>,
    return
  }
  func.func @transform_0(%arg0: i32, %arg1: i32) -> (i32, i32, i32) {
    %c0_i32 = arith.constant 0 : i32
    %c0_i32_0 = arith.constant 0 : i32
    %c0_i32_1 = arith.constant 0 : i32
    return %arg0, %c0_i32, %c0_i32_0 : i32, i32, i32
  }
  func.func @transform_1(%arg0: i32, %arg1: i32) -> (i32, i32) {
    %c0_i32 = arith.constant 0 : i32
    %c0_i32_0 = arith.constant 0 : i32
    %c0_i32_1 = arith.constant 0 : i32
    return %c0_i32, %c0_i32_0 : i32, i32
  }
  func.func @transform_2(%arg0: i32, %arg1: i32) -> (i32, i32) {
    %c0_i32 = arith.constant 0 : i32
    %c0_i32_0 = arith.constant 0 : i32
    %c0_i32_1 = arith.constant 0 : i32
    return %c0_i32, %c0_i32_0 : i32, i32
  }
  func.func @transform_3(%arg0: i32, %arg1: i32) -> (i32, i32, i32) {
    %c0_i32 = arith.constant 0 : i32
    %c0_i32_0 = arith.constant 0 : i32
    return %arg0, %arg1, %c0_i32 : i32, i32, i32
  }
}

module attributes {stable_mosaic.version = 11 : i64} {
  func.func @_mha_kernel(%arg0: i32, %arg1: i32, %arg2: memref<1x8x32xf32, #tpu.memory_space<vmem>>, %arg3: memref<32x64xf32, #tpu.memory_space<vmem>>, %arg4: memref<32x64xf32, #tpu.memory_space<vmem>>, %arg5: memref<1x8x32xf32, #tpu.memory_space<vmem>>, %arg6: memref<4x8x8xf32, #tpu.memory_space<vmem>>, %arg7: memref<4x8x8xf32, #tpu.memory_space<vmem>>, %arg8: memref<4x8x8xf32, #tpu.memory_space<vmem>>) attributes {dimension_semantics = [#tpu.dimension_semantics<parallel>, #tpu.dimension_semantics<arbitrary>], iteration_bounds = array<i64: 2, 1>, scalar_prefetch = 0 : i64, scratch_operands = 3 : i64, tpu.core_type = #tpu.core_type<tc>, window_params = [{transform_indices = @transform_0, window_bounds = array<i64: 1, 8, 32>}, {pipeline_mode = #tpu.pipeline_mode<synchronous>, transform_indices = @transform_1, window_bounds = array<i64: 32, 64>}, {pipeline_mode = #tpu.pipeline_mode<synchronous>, transform_indices = @transform_2, window_bounds = array<i64: 32, 64>}, {transform_indices = @transform_3, window_bounds = array<i64: 1, 8, 32>}]} {
    %c0_i32 = arith.constant 0 : i32
    %0 = arith.cmpi eq, %arg1, %c0_i32 : i32
    %1 = arith.extui %0 : i1 to i32
    %c0_i32_0 = arith.constant 0 : i32
    %2 = arith.cmpi ne, %1, %c0_i32_0 : i32
    scf.if %2 {
      %c0_70 = arith.constant 0 : index
      %c0_71 = arith.constant 0 : index
      %c0_72 = arith.constant 0 : index
      %109 = vector.load %arg2[%c0_70, %c0_71, %c0_72] : memref<1x8x32xf32, #tpu.memory_space<vmem>>, vector<1x8x32xf32>
      %110 = vector.shape_cast %109 : vector<1x8x32xf32> to vector<8x32xf32>
      %c0_73 = arith.constant 0 : index
      %c0_74 = arith.constant 0 : index
      %111 = vector.load %arg4[%c0_73, %c0_74] : memref<32x64xf32, #tpu.memory_space<vmem>>, vector<32x64xf32>
      %cst_75 = arith.constant dense<0.000000e+00> : vector<8x64xf32>
      %112 = tpu.matmul %110, %111, %cst_75 {dimension_numbers = #tpu.dot_dimension_numbers<[1], [0], [0], [1], [0, 0, 1, 1], [], []>} : vector<8x32xf32>, vector<32x64xf32>, vector<8x64xf32> -> vector<8x64xf32>
      %113 = vector.extract_strided_slice %112 {offsets = [0, 0], sizes = [8, 8], strides = [1, 1]} : vector<8x64xf32> to vector<8x8xf32>
      %c0_76 = arith.constant 0 : index
      %c0_77 = arith.constant 0 : index
      %c0_78 = arith.constant 0 : index
      %114 = vector.load %arg6[%c0_76, %c0_77, %c0_78] : memref<4x8x8xf32, #tpu.memory_space<vmem>>, vector<1x8x8xf32>
      %115 = vector.shape_cast %114 : vector<1x8x8xf32> to vector<8x8xf32>
      %116 = vector.shape_cast %113 : vector<8x8xf32> to vector<1x8x8xf32>
      tpu.vector_store %arg6[%c0_76, %c0_77, %c0_78], %116 {strides = array<i32>} : memref<4x8x8xf32, #tpu.memory_space<vmem>>, vector<1x8x8xf32>,
      %117 = vector.extract_strided_slice %112 {offsets = [0, 32], sizes = [8, 8], strides = [1, 1]} : vector<8x64xf32> to vector<8x8xf32>
      %c0_79 = arith.constant 0 : index
      %c0_80 = arith.constant 0 : index
      %c0_81 = arith.constant 0 : index
      %118 = vector.load %arg7[%c0_79, %c0_80, %c0_81] : memref<4x8x8xf32, #tpu.memory_space<vmem>>, vector<1x8x8xf32>
      %119 = vector.shape_cast %118 : vector<1x8x8xf32> to vector<8x8xf32>
      %120 = vector.shape_cast %117 : vector<8x8xf32> to vector<1x8x8xf32>
      tpu.vector_store %arg7[%c0_79, %c0_80, %c0_81], %120 {strides = array<i32>} : memref<4x8x8xf32, #tpu.memory_space<vmem>>, vector<1x8x8xf32>,
      %121 = vector.extract_strided_slice %112 {offsets = [0, 8], sizes = [8, 8], strides = [1, 1]} : vector<8x64xf32> to vector<8x8xf32>
      %c1_82 = arith.constant 1 : index
      %c0_83 = arith.constant 0 : index
      %c0_84 = arith.constant 0 : index
      %122 = vector.load %arg6[%c1_82, %c0_83, %c0_84] : memref<4x8x8xf32, #tpu.memory_space<vmem>>, vector<1x8x8xf32>
      %123 = vector.shape_cast %122 : vector<1x8x8xf32> to vector<8x8xf32>
      %124 = vector.shape_cast %121 : vector<8x8xf32> to vector<1x8x8xf32>
      tpu.vector_store %arg6[%c1_82, %c0_83, %c0_84], %124 {strides = array<i32>} : memref<4x8x8xf32, #tpu.memory_space<vmem>>, vector<1x8x8xf32>,
      %125 = vector.extract_strided_slice %112 {offsets = [0, 40], sizes = [8, 8], strides = [1, 1]} : vector<8x64xf32> to vector<8x8xf32>
      %c1_85 = arith.constant 1 : index
      %c0_86 = arith.constant 0 : index
      %c0_87 = arith.constant 0 : index
      %126 = vector.load %arg7[%c1_85, %c0_86, %c0_87] : memref<4x8x8xf32, #tpu.memory_space<vmem>>, vector<1x8x8xf32>
      %127 = vector.shape_cast %126 : vector<1x8x8xf32> to vector<8x8xf32>
      %128 = vector.shape_cast %125 : vector<8x8xf32> to vector<1x8x8xf32>
      tpu.vector_store %arg7[%c1_85, %c0_86, %c0_87], %128 {strides = array<i32>} : memref<4x8x8xf32, #tpu.memory_space<vmem>>, vector<1x8x8xf32>,
      %129 = vector.extract_strided_slice %112 {offsets = [0, 16], sizes = [8, 8], strides = [1, 1]} : vector<8x64xf32> to vector<8x8xf32>
      %c2_88 = arith.constant 2 : index
      %c0_89 = arith.constant 0 : index
      %c0_90 = arith.constant 0 : index
      %130 = vector.load %arg6[%c2_88, %c0_89, %c0_90] : memref<4x8x8xf32, #tpu.memory_space<vmem>>, vector<1x8x8xf32>
      %131 = vector.shape_cast %130 : vector<1x8x8xf32> to vector<8x8xf32>
      %132 = vector.shape_cast %129 : vector<8x8xf32> to vector<1x8x8xf32>
      tpu.vector_store %arg6[%c2_88, %c0_89, %c0_90], %132 {strides = array<i32>} : memref<4x8x8xf32, #tpu.memory_space<vmem>>, vector<1x8x8xf32>,
      %133 = vector.extract_strided_slice %112 {offsets = [0, 48], sizes = [8, 8], strides = [1, 1]} : vector<8x64xf32> to vector<8x8xf32>
      %c2_91 = arith.constant 2 : index
      %c0_92 = arith.constant 0 : index
      %c0_93 = arith.constant 0 : index
      %134 = vector.load %arg7[%c2_91, %c0_92, %c0_93] : memref<4x8x8xf32, #tpu.memory_space<vmem>>, vector<1x8x8xf32>
      %135 = vector.shape_cast %134 : vector<1x8x8xf32> to vector<8x8xf32>
      %136 = vector.shape_cast %133 : vector<8x8xf32> to vector<1x8x8xf32>
      tpu.vector_store %arg7[%c2_91, %c0_92, %c0_93], %136 {strides = array<i32>} : memref<4x8x8xf32, #tpu.memory_space<vmem>>, vector<1x8x8xf32>,
      %137 = vector.extract_strided_slice %112 {offsets = [0, 24], sizes = [8, 8], strides = [1, 1]} : vector<8x64xf32> to vector<8x8xf32>
      %c3_94 = arith.constant 3 : index
      %c0_95 = arith.constant 0 : index
      %c0_96 = arith.constant 0 : index
      %138 = vector.load %arg6[%c3_94, %c0_95, %c0_96] : memref<4x8x8xf32, #tpu.memory_space<vmem>>, vector<1x8x8xf32>
      %139 = vector.shape_cast %138 : vector<1x8x8xf32> to vector<8x8xf32>
      %140 = vector.shape_cast %137 : vector<8x8xf32> to vector<1x8x8xf32>
      tpu.vector_store %arg6[%c3_94, %c0_95, %c0_96], %140 {strides = array<i32>} : memref<4x8x8xf32, #tpu.memory_space<vmem>>, vector<1x8x8xf32>,
      %141 = vector.extract_strided_slice %112 {offsets = [0, 56], sizes = [8, 8], strides = [1, 1]} : vector<8x64xf32> to vector<8x8xf32>
      %c3_97 = arith.constant 3 : index
      %c0_98 = arith.constant 0 : index
      %c0_99 = arith.constant 0 : index
      %142 = vector.load %arg7[%c3_97, %c0_98, %c0_99] : memref<4x8x8xf32, #tpu.memory_space<vmem>>, vector<1x8x8xf32>
      %143 = vector.shape_cast %142 : vector<1x8x8xf32> to vector<8x8xf32>
      %144 = vector.shape_cast %141 : vector<8x8xf32> to vector<1x8x8xf32>
      tpu.vector_store %arg7[%c3_97, %c0_98, %c0_99], %144 {strides = array<i32>} : memref<4x8x8xf32, #tpu.memory_space<vmem>>, vector<1x8x8xf32>,
    } else {
    }
    %c8_i32 = arith.constant 8 : i32
    %3 = arith.muli %arg1, %c8_i32 : i32
    %4 = tpu.assume_multiple %3, 8 : i32
    %c0 = arith.constant 0 : index
    %5 = arith.index_cast %4 : i32 to index
    %c0_1 = arith.constant 0 : index
    %6 = vector.load %arg2[%c0, %5, %c0_1] : memref<1x8x32xf32, #tpu.memory_space<vmem>>, vector<1x8x32xf32>
    %7 = vector.shape_cast %6 : vector<1x8x32xf32> to vector<8x32xf32>
    %c0_2 = arith.constant 0 : index
    %c0_3 = arith.constant 0 : index
    %8 = vector.load %arg3[%c0_2, %c0_3] : memref<32x64xf32, #tpu.memory_space<vmem>>, vector<32x64xf32>
    %cst = arith.constant dense<0.000000e+00> : vector<8x64xf32>
    %9 = tpu.matmul %7, %8, %cst {dimension_numbers = #tpu.dot_dimension_numbers<[1], [0], [0], [1], [0, 0, 1, 1], [], []>} : vector<8x32xf32>, vector<32x64xf32>, vector<8x64xf32> -> vector<8x64xf32>
    %10 = vector.extract_strided_slice %9 {offsets = [0, 0], sizes = [8, 32], strides = [1, 1]} : vector<8x64xf32> to vector<8x32xf32>
    %cst_4 = arith.constant 0.353553385 : f32
    %11 = vector.broadcast %cst_4 : f32 to vector<8x32xf32>
    %12 = arith.mulf %10, %11 : vector<8x32xf32>
    %13 = vector.extract_strided_slice %12 {offsets = [0, 0], sizes = [8, 8], strides = [1, 1]} : vector<8x32xf32> to vector<8x8xf32>
    %c0_5 = arith.constant 0 : index
    %c0_6 = arith.constant 0 : index
    %c0_7 = arith.constant 0 : index
    %14 = vector.load %arg6[%c0_5, %c0_6, %c0_7] : memref<4x8x8xf32, #tpu.memory_space<vmem>>, vector<1x8x8xf32>
    %15 = vector.shape_cast %14 : vector<1x8x8xf32> to vector<8x8xf32>
    %c0_8 = arith.constant 0 : index
    %c0_9 = arith.constant 0 : index
    %c0_10 = arith.constant 0 : index
    %16 = vector.load %arg7[%c0_8, %c0_9, %c0_10] : memref<4x8x8xf32, #tpu.memory_space<vmem>>, vector<1x8x8xf32>
    %17 = vector.shape_cast %16 : vector<1x8x8xf32> to vector<8x8xf32>
    %cst_11 = arith.constant dense<0.000000e+00> : vector<8x8xf32>
    %18 = tpu.matmul %13, %15, %cst_11 {dimension_numbers = #tpu.dot_dimension_numbers<[1], [1], [0], [0], [0, 0, 1, 0], [], []>} : vector<8x8xf32>, vector<8x8xf32>, vector<8x8xf32> -> vector<8x8xf32>
    %cst_12 = arith.constant dense<0xFF800000> : vector<8xf32>
    %19 = vector.multi_reduction <maximumf>, %18, %cst_12 [1] : vector<8x8xf32> to vector<8xf32>
    %20 = vector.shape_cast %19 : vector<8xf32> to vector<8x1xf32>
    %21 = vector.broadcast %20 : vector<8x1xf32> to vector<8x8xf32>
    %22 = arith.subf %18, %21 : vector<8x8xf32>
    %23 = math.exp %22 : vector<8x8xf32>
    %cst_13 = arith.constant dense<0.000000e+00> : vector<8xf32>
    %24 = vector.multi_reduction <add>, %23, %cst_13 [1] : vector<8x8xf32> to vector<8xf32>
    %25 = vector.shape_cast %24 : vector<8xf32> to vector<8x1xf32>
    %cst_14 = arith.constant dense<0.000000e+00> : vector<8x8xf32>
    %26 = tpu.matmul %23, %17, %cst_14 {dimension_numbers = #tpu.dot_dimension_numbers<[1], [0], [0], [1], [0, 0, 1, 1], [], []>} : vector<8x8xf32>, vector<8x8xf32>, vector<8x8xf32> -> vector<8x8xf32>
    %27 = tpu.reciprocal %25 : vector<8x1xf32> -> vector<8x1xf32>
    %28 = vector.broadcast %27 : vector<8x1xf32> to vector<8x8xf32>
    %29 = arith.mulf %26, %28 : vector<8x8xf32>
    %c0_15 = arith.constant 0 : index
    %c0_16 = arith.constant 0 : index
    %c0_17 = arith.constant 0 : index
    %30 = vector.load %arg8[%c0_15, %c0_16, %c0_17] : memref<4x8x8xf32, #tpu.memory_space<vmem>>, vector<1x8x8xf32>
    %31 = vector.shape_cast %30 : vector<1x8x8xf32> to vector<8x8xf32>
    %32 = vector.shape_cast %29 : vector<8x8xf32> to vector<1x8x8xf32>
    tpu.vector_store %arg8[%c0_15, %c0_16, %c0_17], %32 {strides = array<i32>} : memref<4x8x8xf32, #tpu.memory_space<vmem>>, vector<1x8x8xf32>,
    %33 = vector.extract_strided_slice %12 {offsets = [0, 8], sizes = [8, 8], strides = [1, 1]} : vector<8x32xf32> to vector<8x8xf32>
    %c1 = arith.constant 1 : index
    %c0_18 = arith.constant 0 : index
    %c0_19 = arith.constant 0 : index
    %34 = vector.load %arg6[%c1, %c0_18, %c0_19] : memref<4x8x8xf32, #tpu.memory_space<vmem>>, vector<1x8x8xf32>
    %35 = vector.shape_cast %34 : vector<1x8x8xf32> to vector<8x8xf32>
    %c1_20 = arith.constant 1 : index
    %c0_21 = arith.constant 0 : index
    %c0_22 = arith.constant 0 : index
    %36 = vector.load %arg7[%c1_20, %c0_21, %c0_22] : memref<4x8x8xf32, #tpu.memory_space<vmem>>, vector<1x8x8xf32>
    %37 = vector.shape_cast %36 : vector<1x8x8xf32> to vector<8x8xf32>
    %cst_23 = arith.constant dense<0.000000e+00> : vector<8x8xf32>
    %38 = tpu.matmul %33, %35, %cst_23 {dimension_numbers = #tpu.dot_dimension_numbers<[1], [1], [0], [0], [0, 0, 1, 0], [], []>} : vector<8x8xf32>, vector<8x8xf32>, vector<8x8xf32> -> vector<8x8xf32>
    %cst_24 = arith.constant dense<0xFF800000> : vector<8xf32>
    %39 = vector.multi_reduction <maximumf>, %38, %cst_24 [1] : vector<8x8xf32> to vector<8xf32>
    %40 = vector.shape_cast %39 : vector<8xf32> to vector<8x1xf32>
    %41 = vector.broadcast %40 : vector<8x1xf32> to vector<8x8xf32>
    %42 = arith.subf %38, %41 : vector<8x8xf32>
    %43 = math.exp %42 : vector<8x8xf32>
    %cst_25 = arith.constant dense<0.000000e+00> : vector<8xf32>
    %44 = vector.multi_reduction <add>, %43, %cst_25 [1] : vector<8x8xf32> to vector<8xf32>
    %45 = vector.shape_cast %44 : vector<8xf32> to vector<8x1xf32>
    %cst_26 = arith.constant dense<0.000000e+00> : vector<8x8xf32>
    %46 = tpu.matmul %43, %37, %cst_26 {dimension_numbers = #tpu.dot_dimension_numbers<[1], [0], [0], [1], [0, 0, 1, 1], [], []>} : vector<8x8xf32>, vector<8x8xf32>, vector<8x8xf32> -> vector<8x8xf32>
    %47 = tpu.reciprocal %45 : vector<8x1xf32> -> vector<8x1xf32>
    %48 = vector.broadcast %47 : vector<8x1xf32> to vector<8x8xf32>
    %49 = arith.mulf %46, %48 : vector<8x8xf32>
    %c1_27 = arith.constant 1 : index
    %c0_28 = arith.constant 0 : index
    %c0_29 = arith.constant 0 : index
    %50 = vector.load %arg8[%c1_27, %c0_28, %c0_29] : memref<4x8x8xf32, #tpu.memory_space<vmem>>, vector<1x8x8xf32>
    %51 = vector.shape_cast %50 : vector<1x8x8xf32> to vector<8x8xf32>
    %52 = vector.shape_cast %49 : vector<8x8xf32> to vector<1x8x8xf32>
    tpu.vector_store %arg8[%c1_27, %c0_28, %c0_29], %52 {strides = array<i32>} : memref<4x8x8xf32, #tpu.memory_space<vmem>>, vector<1x8x8xf32>,
    %53 = vector.extract_strided_slice %12 {offsets = [0, 16], sizes = [8, 8], strides = [1, 1]} : vector<8x32xf32> to vector<8x8xf32>
    %c2 = arith.constant 2 : index
    %c0_30 = arith.constant 0 : index
    %c0_31 = arith.constant 0 : index
    %54 = vector.load %arg6[%c2, %c0_30, %c0_31] : memref<4x8x8xf32, #tpu.memory_space<vmem>>, vector<1x8x8xf32>
    %55 = vector.shape_cast %54 : vector<1x8x8xf32> to vector<8x8xf32>
    %c2_32 = arith.constant 2 : index
    %c0_33 = arith.constant 0 : index
    %c0_34 = arith.constant 0 : index
    %56 = vector.load %arg7[%c2_32, %c0_33, %c0_34] : memref<4x8x8xf32, #tpu.memory_space<vmem>>, vector<1x8x8xf32>
    %57 = vector.shape_cast %56 : vector<1x8x8xf32> to vector<8x8xf32>
    %cst_35 = arith.constant dense<0.000000e+00> : vector<8x8xf32>
    %58 = tpu.matmul %53, %55, %cst_35 {dimension_numbers = #tpu.dot_dimension_numbers<[1], [1], [0], [0], [0, 0, 1, 0], [], []>} : vector<8x8xf32>, vector<8x8xf32>, vector<8x8xf32> -> vector<8x8xf32>
    %cst_36 = arith.constant dense<0xFF800000> : vector<8xf32>
    %59 = vector.multi_reduction <maximumf>, %58, %cst_36 [1] : vector<8x8xf32> to vector<8xf32>
    %60 = vector.shape_cast %59 : vector<8xf32> to vector<8x1xf32>
    %61 = vector.broadcast %60 : vector<8x1xf32> to vector<8x8xf32>
    %62 = arith.subf %58, %61 : vector<8x8xf32>
    %63 = math.exp %62 : vector<8x8xf32>
    %cst_37 = arith.constant dense<0.000000e+00> : vector<8xf32>
    %64 = vector.multi_reduction <add>, %63, %cst_37 [1] : vector<8x8xf32> to vector<8xf32>
    %65 = vector.shape_cast %64 : vector<8xf32> to vector<8x1xf32>
    %cst_38 = arith.constant dense<0.000000e+00> : vector<8x8xf32>
    %66 = tpu.matmul %63, %57, %cst_38 {dimension_numbers = #tpu.dot_dimension_numbers<[1], [0], [0], [1], [0, 0, 1, 1], [], []>} : vector<8x8xf32>, vector<8x8xf32>, vector<8x8xf32> -> vector<8x8xf32>
    %67 = tpu.reciprocal %65 : vector<8x1xf32> -> vector<8x1xf32>
    %68 = vector.broadcast %67 : vector<8x1xf32> to vector<8x8xf32>
    %69 = arith.mulf %66, %68 : vector<8x8xf32>
    %c2_39 = arith.constant 2 : index
    %c0_40 = arith.constant 0 : index
    %c0_41 = arith.constant 0 : index
    %70 = vector.load %arg8[%c2_39, %c0_40, %c0_41] : memref<4x8x8xf32, #tpu.memory_space<vmem>>, vector<1x8x8xf32>
    %71 = vector.shape_cast %70 : vector<1x8x8xf32> to vector<8x8xf32>
    %72 = vector.shape_cast %69 : vector<8x8xf32> to vector<1x8x8xf32>
    tpu.vector_store %arg8[%c2_39, %c0_40, %c0_41], %72 {strides = array<i32>} : memref<4x8x8xf32, #tpu.memory_space<vmem>>, vector<1x8x8xf32>,
    %73 = vector.extract_strided_slice %12 {offsets = [0, 24], sizes = [8, 8], strides = [1, 1]} : vector<8x32xf32> to vector<8x8xf32>
    %c3 = arith.constant 3 : index
    %c0_42 = arith.constant 0 : index
    %c0_43 = arith.constant 0 : index
    %74 = vector.load %arg6[%c3, %c0_42, %c0_43] : memref<4x8x8xf32, #tpu.memory_space<vmem>>, vector<1x8x8xf32>
    %75 = vector.shape_cast %74 : vector<1x8x8xf32> to vector<8x8xf32>
    %c3_44 = arith.constant 3 : index
    %c0_45 = arith.constant 0 : index
    %c0_46 = arith.constant 0 : index
    %76 = vector.load %arg7[%c3_44, %c0_45, %c0_46] : memref<4x8x8xf32, #tpu.memory_space<vmem>>, vector<1x8x8xf32>
    %77 = vector.shape_cast %76 : vector<1x8x8xf32> to vector<8x8xf32>
    %cst_47 = arith.constant dense<0.000000e+00> : vector<8x8xf32>
    %78 = tpu.matmul %73, %75, %cst_47 {dimension_numbers = #tpu.dot_dimension_numbers<[1], [1], [0], [0], [0, 0, 1, 0], [], []>} : vector<8x8xf32>, vector<8x8xf32>, vector<8x8xf32> -> vector<8x8xf32>
    %cst_48 = arith.constant dense<0xFF800000> : vector<8xf32>
    %79 = vector.multi_reduction <maximumf>, %78, %cst_48 [1] : vector<8x8xf32> to vector<8xf32>
    %80 = vector.shape_cast %79 : vector<8xf32> to vector<8x1xf32>
    %81 = vector.broadcast %80 : vector<8x1xf32> to vector<8x8xf32>
    %82 = arith.subf %78, %81 : vector<8x8xf32>
    %83 = math.exp %82 : vector<8x8xf32>
    %cst_49 = arith.constant dense<0.000000e+00> : vector<8xf32>
    %84 = vector.multi_reduction <add>, %83, %cst_49 [1] : vector<8x8xf32> to vector<8xf32>
    %85 = vector.shape_cast %84 : vector<8xf32> to vector<8x1xf32>
    %cst_50 = arith.constant dense<0.000000e+00> : vector<8x8xf32>
    %86 = tpu.matmul %83, %77, %cst_50 {dimension_numbers = #tpu.dot_dimension_numbers<[1], [0], [0], [1], [0, 0, 1, 1], [], []>} : vector<8x8xf32>, vector<8x8xf32>, vector<8x8xf32> -> vector<8x8xf32>
    %87 = tpu.reciprocal %85 : vector<8x1xf32> -> vector<8x1xf32>
    %88 = vector.broadcast %87 : vector<8x1xf32> to vector<8x8xf32>
    %89 = arith.mulf %86, %88 : vector<8x8xf32>
    %c3_51 = arith.constant 3 : index
    %c0_52 = arith.constant 0 : index
    %c0_53 = arith.constant 0 : index
    %90 = vector.load %arg8[%c3_51, %c0_52, %c0_53] : memref<4x8x8xf32, #tpu.memory_space<vmem>>, vector<1x8x8xf32>
    %91 = vector.shape_cast %90 : vector<1x8x8xf32> to vector<8x8xf32>
    %92 = vector.shape_cast %89 : vector<8x8xf32> to vector<1x8x8xf32>
    tpu.vector_store %arg8[%c3_51, %c0_52, %c0_53], %92 {strides = array<i32>} : memref<4x8x8xf32, #tpu.memory_space<vmem>>, vector<1x8x8xf32>,
    %c0_54 = arith.constant 0 : index
    %c0_55 = arith.constant 0 : index
    %c0_56 = arith.constant 0 : index
    %93 = vector.load %arg8[%c0_54, %c0_55, %c0_56] : memref<4x8x8xf32, #tpu.memory_space<vmem>>, vector<1x8x8xf32>
    %94 = vector.shape_cast %93 : vector<1x8x8xf32> to vector<8x8xf32>
    %c1_57 = arith.constant 1 : index
    %c0_58 = arith.constant 0 : index
    %c0_59 = arith.constant 0 : index
    %95 = vector.load %arg8[%c1_57, %c0_58, %c0_59] : memref<4x8x8xf32, #tpu.memory_space<vmem>>, vector<1x8x8xf32>
    %96 = vector.shape_cast %95 : vector<1x8x8xf32> to vector<8x8xf32>
    %c2_60 = arith.constant 2 : index
    %c0_61 = arith.constant 0 : index
    %c0_62 = arith.constant 0 : index
    %97 = vector.load %arg8[%c2_60, %c0_61, %c0_62] : memref<4x8x8xf32, #tpu.memory_space<vmem>>, vector<1x8x8xf32>
    %98 = vector.shape_cast %97 : vector<1x8x8xf32> to vector<8x8xf32>
    %c3_63 = arith.constant 3 : index
    %c0_64 = arith.constant 0 : index
    %c0_65 = arith.constant 0 : index
    %99 = vector.load %arg8[%c3_63, %c0_64, %c0_65] : memref<4x8x8xf32, #tpu.memory_space<vmem>>, vector<1x8x8xf32>
    %100 = vector.shape_cast %99 : vector<1x8x8xf32> to vector<8x8xf32>
    %101 = tpu.concatenate %94, %96, %98, %100 in 1 : vector<8x8xf32>, vector<8x8xf32>, vector<8x8xf32>, vector<8x8xf32> -> vector<8x32xf32>
    %102 = vector.extract_strided_slice %9 {offsets = [0, 32], sizes = [8, 32], strides = [1, 1]} : vector<8x64xf32> to vector<8x32xf32>
    %103 = arith.addf %101, %102 : vector<8x32xf32>
    %cst_66 = arith.constant 0.000000e+00 : f32
    %104 = vector.broadcast %cst_66 : f32 to vector<8x32xf32>
    %105 = arith.maximumf %103, %104 : vector<8x32xf32>
    %c0_67 = arith.constant 0 : index
    %c0_68 = arith.constant 0 : index
    %c0_69 = arith.constant 0 : index
    %106 = vector.load %arg5[%c0_67, %c0_68, %c0_69] : memref<1x8x32xf32, #tpu.memory_space<vmem>>, vector<1x8x32xf32>
    %107 = vector.shape_cast %106 : vector<1x8x32xf32> to vector<8x32xf32>
    %108 = vector.shape_cast %105 : vector<8x32xf32> to vector<1x8x32xf32>
    tpu.vector_store %arg5[%c0_67, %c0_68, %c0_69], %108 {strides = array<i32>} : memref<1x8x32xf32, #tpu.memory_space<vmem>>, vector<1x8x32xf32>,
    return
  }
  func.func @transform_0(%arg0: i32, %arg1: i32) -> (i32, i32, i32) {
    %c0_i32 = arith.constant 0 : i32
    %c0_i32_0 = arith.constant 0 : i32
    %c0_i32_1 = arith.constant 0 : i32
    return %arg0, %c0_i32, %c0_i32_0 : i32, i32, i32
  }
  func.func @transform_1(%arg0: i32, %arg1: i32) -> (i32, i32) {
    %c0_i32 = arith.constant 0 : i32
    %c0_i32_0 = arith.constant 0 : i32
    %c0_i32_1 = arith.constant 0 : i32
    return %c0_i32, %c0_i32_0 : i32, i32
  }
  func.func @transform_2(%arg0: i32, %arg1: i32) -> (i32, i32) {
    %c0_i32 = arith.constant 0 : i32
    %c0_i32_0 = arith.constant 0 : i32
    %c0_i32_1 = arith.constant 0 : i32
    return %c0_i32, %c0_i32_0 : i32, i32
  }
  func.func @transform_3(%arg0: i32, %arg1: i32) -> (i32, i32, i32) {
    %c0_i32 = arith.constant 0 : i32
    %c0_i32_0 = arith.constant 0 : i32
    return %arg0, %arg1, %c0_i32 : i32, i32, i32
  }
}

</mosaic_0001>

<bundles_post_ra>
// kernel: tpu_custom_call.1
= control target key start
LH: loop header
LB: loop body
LE: loop exit
PB: predicated region body
PF: predicated region fallthrough
CT: control target
= control target key end

     0   :  { %8 = vsyncpa [#allocation6], 0  ;;  %s2031_s0 = inlined_call_operand.hbm [shape: f32[2,8,32], index: 0, kind: input, shape index: {}]   ;;  %s2032_s1 = inlined_call_operand.hbm [shape: f32[32,64], index: 1, kind: input, shape index: {}]   ;;  %s2033_s2 = inlined_call_operand.hbm [shape: f32[32,64], index: 2, kind: input, shape index: {}]   ;;  %s2034_s3 = inlined_call_operand.hbm [shape: f32[2,8,32], index: 3, kind: output, shape index: {}]  }
   0x1   :  { %10 = vsyncpa [#allocation6 + $0x1], 0 }
   0x2   :  { %11 = vsyncpa [#allocation9], 0 }
   0x3   :  { %12 = vsyncpa [#allocation7], 0 }
   0x4   :  { %14 = vsyncpa [#allocation7 + $0x1], 0  ;;  %s1697_s12 = smov 0   ;;  %s1699_s13 = smov 0  }
   0x5   :  { %s1701_s14 = smov 0   ;;  %s1703_s15 = smov 0  }
   0x6   :  { %s1705_s16 = smov 0   ;;  %s1707_s17 = smov 0  }
   0x7 LB: > { %s1239_s18 = sadd.s32 4294967295, %s1656_s17   ;;  %s1240_s19 = sadd.s32 4294967294, %s1656_s17   ;;  %s1656_s17 = sphi %s1707_s17, %s20_s17   ;;  %s1652_s16 = sphi %s1705_s16, %s2056_s16   ;;  %s1648_s15 = sphi %s1703_s15, %s2055_s15   ;;  %s1644_s14 = sphi %s1701_s14, %s2054_s14   ;;  %s1640_s13 = sphi %s1699_s13, %s2053_s13   ;;  %s1636_s12 = sphi %s1697_s12, %s2052_s12  }
   0x8   : > { %p52_p0 = scmp.ne.s32.totalorder %s1640_s13, %s1636_s12  ;;  %p1731_p1 = scmp.eq.s32.totalorder %s1239_s18, 0 }
   0x9   : > { %p1735_p2 = scmp.eq.s32.totalorder %s1239_s18, 1  ;;  %p126_p3 = scmp.eq.s32.totalorder %s1240_s19, 1 }
   0xa   : > { %s2039_s20 = scalar_select %p1731_p1, 1, 0 }
   0xb   : > { %p1741_p4 = por %p1731_p1, %p52_p0  ;;  %p1241_p5 = scmp.ge.s32.totalorder %s1656_s17, 1 }
   0xc   : > { %p1746_p6 = por %p126_p3, %p52_p0  ;;  %p133_p7 = scmp.lt.s32.totalorder %s1656_s17, 3 }
   0xd   : > { %s2041_s22 = scalar_select %p1741_p4, 1, 0 }
   0xe   : > { %s2042_s23 = scalar_select %p1746_p6, 1, 0 }
   0xf   : > { %p1751_p8 = pnand %p1241_p5, %p133_p7  ;;  %s1658_s25 = smov [#allocation8]  }
  0x10   : > { %s145_s26 = sshll.u32 %s1658_s25, 4  ;;  %s1659_s28 = smov [#allocation10]   ;;  %s1755_s26 = int_to_ptr.vmem [resolvable:$true] %s145_s26 }
  0x11   : > { %p1382_p9 = pneg %p1751_p8  ;;  %s158_s29 = sshll.u32 %s1659_s28, 4  ;;  %s1766_s29 = int_to_ptr.vmem [resolvable:$true] %s158_s29 }
  0x12   : > { %s1484_s5 = scalar_lea.hbm %s2032_s1, 512 }
  0x13   : > { %p1762_p11 = pnand %p1382_p9, %p1731_p1  ;;  %p1485_p12 = scmp.ne.s32.totalorder %s2032_s1, %s1484_s5 }
  0x14   : > { %p1491_p5 = scmp.lt.u32.totalorder %s1484_s5, %s2032_s1 }
  0x15   : > { %p1486_p13 = pneg %p1762_p11 }
  0x17   : > { %p1487_p0 = pnand %p1486_p13, %p1485_p12 }
  0x19   : > { %p1488_p3 = pneg %p1487_p0 }
  0x1b   : > { %p1493_p7 = pnand %p1491_p5, %p1488_p3 }
  0x1d   : > { %1496 = shalt.err (!%p1493_p7)
}
  0x1e   : > { %s1497_s10 = scalar_lea.vmem %s1755_s26, 512  ;;  %p1505_p1 = scmp.lt.s32.totalorder %s1755_s26, %s1755_s26 }
  0x1f   : > { %p1498_p9 = scmp.ne.s32.totalorder %s1755_s26, %s1497_s10  ;;  %p1506_p12 = scmp.lt.s32.totalorder %s1497_s10, %s1497_s10 }
  0x21   : > { %p1500_p10 = pnand %p1498_p9, %p1486_p13  ;;  %p1507_p0 = por %p1506_p12, %p1505_p1 }
  0x23   : > { %p1501_p6 = pneg %p1500_p10 }
  0x25   : > { %p1508_p4 = pnand %p1507_p0, %p1501_p6 }
  0x27   : > { %1511 = shalt.err (!%p1508_p4)
}
  0x28   : > { %s1660_s11 = smov 128   ;;  %s1661_s18 = smov 8  }
  0x29   : > { %1385 = dma.hbm_to_vmem [thread:$0]  (!%p1762_p11), %s2032_s1, 512, %s1755_s26, [#allocation9], %s1660_s11, %s1660_s11, %s1661_s18  }
  0x2a   : > { %s1512_s4 = scalar_lea.hbm %s2033_s2, 512 }
  0x2b   : > { %p1513_p1 = scmp.ne.s32.totalorder %s2033_s2, %s1512_s4  ;;  %p1519_p10 = scmp.lt.u32.totalorder %s1512_s4, %s2033_s2 }
  0x2d   : > { %p1515_p4 = pnand %p1513_p1, %p1486_p13 }
  0x2f   : > { %p1516_p6 = pneg %p1515_p4 }
  0x31   : > { %p1521_p3 = pnand %p1519_p10, %p1516_p6 }
  0x33   : > { %1524 = shalt.err (!%p1521_p3)
}
  0x34   : > { %s1525_s26 = scalar_lea.vmem %s1766_s29, 512  ;;  %p1533_p12 = scmp.lt.s32.totalorder %s1766_s29, %s1766_s29 }
  0x35   : > { %p1526_p5 = scmp.ne.s32.totalorder %s1766_s29, %s1525_s26  ;;  %p1534_p0 = scmp.lt.s32.totalorder %s1525_s26, %s1525_s26 }
  0x37   : > { %p1528_p7 = pnand %p1526_p5, %p1486_p13  ;;  %p1535_p1 = por %p1534_p0, %p1533_p12 }
  0x39   : > { %p1529_p9 = pneg %p1528_p7 }
  0x3b   : > { %p1536_p4 = pnand %p1535_p1, %p1529_p9 }
  0x3d   : > { %1539 = shalt.err (!%p1536_p4)
}
  0x3e   : > { %1388 = dma.hbm_to_vmem [thread:$0]  (!%p1762_p11), %s2033_s2, 512, %s1766_s29, [#allocation9], %s1660_s11, %s1660_s11, %s1661_s18  }
  0x3f   : > { %s32_s19 = sadd.s32 1, %s1652_s16  ;;  %s39_s25 = sadd.s32 1, %s1644_s14 }
  0x40   : > { %p34_p13 = scmp.ge.s32.totalorder %s32_s19, 2  ;;  %p46_p6 = scmp.ne.s32.totalorder %s1644_s14, %s1640_s13 }
  0x41   : > { %p47_p10 = scmp.eq.s32.totalorder %s1656_s17, 0  ;;  %p1399_p3 = scmp.lt.s32.totalorder %s1656_s17, 2 }
  0x42   : > { %s2058_s19 = smov (%p34_p13, %s32_s19), 0  ;;  %p1830_p7 = por %p1735_p2, %p46_p6 }
  0x43   : > { %p48_p5 = por %p47_p10, %p46_p6  ;;  %s36_s28 = ssub.s32 %s1652_s16, %s2058_s19 }
  0x44   : > { %s2045_s27 = scalar_select %p1830_p7, 1, 0 }
  0x45   : > { %s172_s30 = sand.u32 1, %s1644_s14   ;;  %p37_p9 = scmp.eq.s32.totalorder %s36_s28, 0 }
  0x46   : > { %s1245_s29 = sshll.u32 %s172_s30, 3  ;;  %s1246_s11 = sshll.u32 %s1652_s16, 7 }
  0x47   : > { %s1839_s18 = scalar_select %p37_p9, %s1644_s14, %s39_s25  }
  0x48   : > { %s1844_s6 = scalar_lea.hbm %s2031_s0, %s1246_s11  ;;  %s176_s21 = scalar_lea.vmem [#allocation5], %s1245_s29 }
  0x49   : > { %s183_s7 = sshll.u32 %s176_s21, 4  ;;  %p1848_p2 = pnand %p1399_p3, %p48_p5  ;;  %s1852_s7 = int_to_ptr.vmem [resolvable:$true] %s183_s7 }
  0x4a   : > { %s173_s26 = scalar_lea.sflag [#allocation6], %s172_s30  ;;  %s1540_s9 = scalar_lea.hbm %s1844_s6, 128 }
  0x4b   : > { %p1541_p11 = scmp.ne.s32.totalorder %s1844_s6, %s1540_s9  ;;  %p1542_p12 = pneg %p1848_p2 }
  0x4c   : > { %s1545_s28 = scalar_lea.hbm %s2031_s0, 256  ;;  %p1546_p4 = scmp.lt.u32.totalorder %s1844_s6, %s2031_s0 }
  0x4d   : > { %p1543_p0 = pnand %p1542_p12, %p1541_p11  ;;  %p1547_p13 = scmp.lt.u32.totalorder %s1545_s28, %s1540_s9 }
  0x4e   : > { %p1549_p10 = scmp.lt.u32.totalorder %s1540_s9, %s1844_s6 }
  0x4f   : > { %p1544_p1 = pneg %p1543_p0  ;;  %p1548_p6 = por %p1547_p13, %p1546_p4 }
  0x51   : > { %p1550_p3 = por %p1549_p10, %p1548_p6 }
  0x53   : > { %p1551_p5 = pnand %p1550_p3, %p1544_p1 }
  0x55   : > { %1554 = shalt.err (!%p1551_p5)
}
  0x56   : > { %s1555_s30 = scalar_lea.vmem %s1852_s7, 128  ;;  %s1662_s4 = smov [#allocation5]  }
  0x57   : > { %p1556_p9 = scmp.ne.s32.totalorder %s1852_s7, %s1555_s30  ;;  %s1560_s5 = sshll.u32 %s1662_s4, 4  ;;  %s1561_s5 = int_to_ptr.vmem [resolvable:$false] %s1560_s5 }
  0x58   : > { %s1562_s21 = scalar_lea.vmem %s1561_s5, 256  ;;  %p1563_p7 = scmp.lt.s32.totalorder %s1852_s7, %s1561_s5 }
  0x59   : > { %p1558_p11 = pnand %p1556_p9, %p1542_p12  ;;  %p1564_p4 = scmp.lt.s32.totalorder %s1562_s21, %s1555_s30 }
  0x5b   : > { %p1559_p0 = pneg %p1558_p11  ;;  %p1565_p13 = por %p1564_p4, %p1563_p7 }
  0x5d   : > { %p1566_p6 = pnand %p1565_p13, %p1559_p0 }
  0x5f   : > { %1569 = shalt.err (!%p1566_p6)
}
  0x60   : > { %1392 = dma.hbm_to_vmem [thread:$0]  (!%p1848_p2), %s1844_s6, 128, %s1852_s7, %s173_s26  }
  0x61   : > { %192 = sbr.rel (%p1751_p8) target bundleno = 1200 (0x4b0), region = 32  ;;  %s1882_s9 = sand.u32 (!%p1751_p8), 1, %s1640_s13  }
  0x62   : > { %s1248_s10 = sshll.u32 (!%p1751_p8), %s1882_s9, 3  ;;  %s195_s25 = scalar_lea.sflag (!%p1751_p8), [#allocation6], %s1882_s9 }
  0x63   : > { %s198_s28 = scalar_lea.vmem (!%p1751_p8), [#allocation5], %s1248_s10  ;;  %p2047_p7 = scmp.ne.s32.totalorder (!%p1751_p8), %s2041_s22, 0 }
  0x68   : > { %1623 = dma.done.wait (%p2047_p7), %s195_s25, 128  }
  0x69   : > { %1625 = vsyncadd (%p2047_p7), %s195_s25, 4294967168  ;;  %p2048_p2 = scmp.ne.s32.totalorder %s2039_s20, 0 }
  0x6b   : > { %1627 = dma.done.wait (%p2048_p2), [#allocation9], 1024  }
  0x6c   : > { %1629 = vsyncadd (%p2048_p2), [#allocation9], 4294966272  ;;  %v1663_v0 = vmov 0.0|0.0   ;;  %vm1664_vm0 = vmmov 0   ;;  %v1665_v1 = vmov 0.0   ;;  %v234_v2 = vld [vmem:[#allocation10] sm:$0xff] }
  0x6d   : > { %1358 = vmatprep.subr.bf16.mxu0 %v1663_v0  ;;  %1364 = vmatprep.subr.bf16.mxu1 %v1663_v0  ;;  %v235_v3 = vld [vmem:[#allocation10 + $0x8] sm:$0xff]  ;;  %v352_v4 = vld [vmem:[#allocation8] sm:$0xff]  ;;  %v236_v7 = vld [vmem:[#allocation10 + $0x10] sm:$0xff]  ;;  %vm238_vm1 = vcmask 261120   ;;  %vm312_vm2 = vcmask 64512   ;;  %s1666_s20 = smov 104  }
  0x6e   : > { %1304 = vmatprep.mubr.msk.f32.mxu0 %vm1664_vm0, %v1665_v1  ;;  %1315 = vmatprep.mubr.msk.f32.mxu1 %vm1664_vm0, %v1665_v1  ;;  %v1359_v5 = vpack.c.bf16 %v235_v3, %v234_v2  ;;  %v353_v6 = vld [vmem:[#allocation8 + $0x8] sm:$0xff]  ;;  %v237_v8 = vld [vmem:[#allocation10 + $0x18] sm:$0xff]  ;;  %v354_v10 = vld [vmem:[#allocation8 + $0x10] sm:$0xff]  ;;  %s1667_s22 = smov 120   ;;  %s1668_s24 = smov 112   ;;  %vm1113_vm3 = vcmask 130048  }
  0x6f   : > { %v1365_v9 = vpack.c.bf16 %v353_v6, %v352_v4  ;;  %v355_v11 = vld [vmem:[#allocation8 + $0x18] sm:$0xff]  ;;  %v1362_v12 = vpack.c.bf16 %v237_v8, %v236_v7  ;;  %s1669_s6 = smov 96   ;;  %s1670_s7 = smov 80   ;;  %vm1115_vm4 = vcmask 195584  }
  0x70   : > { %1360 = vmatpush3.bf16.msra.mxu0 %v1359_v5  ;;  %v1368_v13 = vpack.c.bf16 %v355_v11, %v354_v10  ;;  %v233_v14 = vld [vmem:[%s198_s28] sm:$0xff]  ;;  %s1671_s8 = smov 72   ;;  %s1672_s26 = smov 88  }
  0x71   : > { %1366 = vmatpush3.bf16.msra.mxu1 %v1365_v9  ;;  %1361 = vmatprep.subr.bf16.mxu0 %v1663_v0  ;;  %s1673_s29 = smov 8   ;;  %s1674_s11 = smov 16  }
  0x72   : > { %1367 = vmatprep.subr.bf16.mxu1 %v1663_v0  ;;  %s1675_s30 = smov 24   ;;  %s1267_s4 = sshll.u32 %s1648_s15, 7 }
  0x73   : > { %s228_s5 = scalar_lea.vmem [#allocation11], %s1248_s10  ;;  %p2049_p12 = scmp.ne.s32.totalorder %s2045_s27, 0 }
  0x74   : > { %1363 = vmatpush3.bf16.msra.mxu0 %v1362_v12  ;;  %s1139_s21 = sshll.u32 %s228_s5, 4  ;;  %s1676_s15 = smov [#allocation11]   ;;  %s1983_s21 = int_to_ptr.vmem [resolvable:$true] %s1139_s21 }
  0x75   : > { %1369 = vmatpush3.bf16.msra.mxu1 %v1368_v13  ;;  %1318 = vmatprep.subr.mxu0 %v1665_v1  ;;  %s1574_s10 = sshll.u32 %s1676_s15, 4  ;;  %s1575_s10 = int_to_ptr.vmem [resolvable:$false] %s1574_s10 }
  0x76   : > { %1323 = vmatprep.subr.mxu1 %v1665_v1  ;;  %p1577_p3 = scmp.lt.s32.totalorder %s1983_s21, %s1575_s10 }
  0x77   : > { %1305 = vmatmul.mubr.msk.f32.vlgmr.msra.gmra.mrb[0].mxu0 %vm238_vm1, %v233_v14 }
  0x78   : > { %1316 = vmatmul.mubr.msk.f32.vlgmr.msra.gmra.mrb[0].mxu1 %vm238_vm1, %v233_v14  ;;  %1320 = vmatprep.mubr.msk.f32.mxu0 %vm1664_vm0, %v1665_v1 }
  0x79   : > { %1325 = vmatprep.mubr.msk.f32.mxu1 %vm1664_vm0, %v1665_v1 }
 0x14a   : > { %v1908_v15 = vpop.f32.mrb[0].mxu0 }
 0x14b   : > { %313 = vst.msk [vmem:[#allocation2] sm:$0xff] %vm312_vm2, %v1908_v15  ;;  %339 = vrot.lane.b32.xlu1 %v1908_v15, %s1666_s20  ;;  %319 = vrot.lane.b32.xlu0 %v1908_v15, %s1667_s22  ;;  %v1306_v16 = vpop.f32.mrb[1].mxu0  ;;  %v1914_v17 = vpop.f32.mrb[0].mxu1 }
 0x14c   : > { %v430_v18 = vmul.f32 0.35355338, %v1914_v17  ;;  %v1317_v19 = vpop.f32.mrb[1].mxu1 }
 0x14f   : > { %599 = vrot.lane.b32.xlu1 %v430_v18, %s1667_s22  ;;  %329 = vrot.lane.b32.xlu0 %v1908_v15, %s1668_s24  ;;  %s1125_s22 = scalar_lea.sflag [#allocation7], %s1882_s9 }
 0x152   : > { %v431_v20 = vld [vmem:[#allocation2] sm:$0xff] }
 0x153   : > { %933 = vrot.lane.b32.xlu1 %v430_v18, %s1666_s20  ;;  %1319 = vmatpush3.xpose.msk.msra.mxu0 %vm312_vm2, %v431_v20  ;;  %s1981_s20 = scalar_lea.hbm %s2034_s3, %s1267_s4 }
 0x154   : > { %766 = vrot.lane.b32.xlu0 %v430_v18, %s1668_s24  ;;  %1328 = vmatprep.subr.mxu0 %v1665_v1  ;;  %s1570_s24 = scalar_lea.vmem %s1983_s21, 128 }
 0x155   : > { %p1571_p8 = scmp.ne.s32.totalorder %s1983_s21, %s1570_s24 }
 0x156   : > { %1321 = vmatmul.mubr.msk.f32.vlgmr.msra.gmra.mrb[2].mxu0 %vm312_vm2, %v430_v18 }
 0x157   : > { %315 = vrot.lane.b32.xlu1 %v1908_v15, %s1669_s6  ;;  %1330 = vmatprep.mubr.msk.f32.mxu0 %vm1664_vm0, %v1665_v1  ;;  %p1572_p1 = pnand %p1571_p8, %p2049_p12 }
 0x159   : > { %p1573_p10 = pneg %p1572_p1 }
 0x1bd   : > { %v340_v21 = vpop.permute.xlu1 %339  ;;  %v320_v22 = vpop.permute.xlu0 %319 }
 0x1be   : > { %343 = vst.msk [vmem:[#allocation2 + $0x18] sm:$0xff] %vm312_vm2, %v340_v21  ;;  %323 = vst.msk [vmem:[#allocation2 + $0x8] sm:$0xff] %vm312_vm2, %v320_v22 }
 0x1c1   : > { %v600_v23 = vpop.permute.xlu1 %599  ;;  %v330_v24 = vpop.permute.xlu0 %329 }
 0x1c2   : > { %333 = vst.msk [vmem:[#allocation2 + $0x10] sm:$0xff] %vm312_vm2, %v330_v24 }
 0x1c5   : > { %v934_v25 = vpop.permute.xlu1 %933  ;;  %v596_v26 = vld [vmem:[#allocation2 + $0x8] sm:$0xff]  ;;  %v930_v30 = vld [vmem:[#allocation2 + $0x18] sm:$0xff] }
 0x1c6   : > { %1329 = vmatpush3.xpose.msk.msra.mxu0 %vm312_vm2, %v596_v26  ;;  %v767_v29 = vpop.permute.xlu0 %766 }
 0x1c7   : > { %1338 = vmatprep.subr.mxu0 %v1665_v1 }
 0x1c9   : > { %v316_v27 = vpop.permute.xlu1 %315  ;;  %1331 = vmatmul.mubr.msk.f32.vlgmr.msra.gmra.mrb[4].mxu0 %vm312_vm2, %v600_v23  ;;  %v763_v28 = vld [vmem:[#allocation2 + $0x10] sm:$0xff] }
 0x1ca   : > { %318 = vst.msk [vmem:[#allocation3] sm:$0xff] %vm312_vm2, %v316_v27  ;;  %1339 = vmatpush3.xpose.msk.msra.mxu0 %vm312_vm2, %v763_v28  ;;  %1340 = vmatprep.mubr.msk.f32.mxu0 %vm1664_vm0, %v1665_v1 }
 0x1cb   : > { %1348 = vmatprep.subr.mxu0 %v1665_v1 }
 0x1cd   : > { %1341 = vmatmul.mubr.msk.f32.vlgmr.msra.gmra.mrb[6].mxu0 %vm312_vm2, %v767_v29 }
 0x1ce   : > { %1349 = vmatpush3.xpose.msk.msra.mxu0 %vm312_vm2, %v930_v30  ;;  %1350 = vmatprep.mubr.msk.f32.mxu0 %vm1664_vm0, %v1665_v1 }
 0x1d1   : > { %1351 = vmatmul.mubr.msk.f32.vlgmr.msra.gmra.mrb[8].mxu0 %vm312_vm2, %v934_v25  ;;  %v432_v31 = vld [vmem:[#allocation3] sm:$0xff] }
 0x1d2   : > { %1324 = vmatpush3.msra.mxu1 %v432_v31 }
 0x1d3   : > { %1333 = vmatprep.subr.mxu1 %v1665_v1 }
 0x229   : > { %v506_v32 = vpop.f32.mrb[2].mxu0 }
 0x22a   : > { %v1322_v33 = vpop.f32.mrb[3].mxu0  ;;  %v510_v34 = vsel %vm312_vm2, %v506_v32, -inf }
 0x22b   : > { %511 = vmax.xlane.f32.xlu0 %v510_v34 }
 0x29c   : > { %v672_v35 = vpop.f32.mrb[4].mxu0 }
 0x29d   : > { %v1332_v36 = vpop.f32.mrb[5].mxu0  ;;  %v676_v37 = vsel %vm312_vm2, %v672_v35, -inf }
 0x29e   : > { %677 = vmax.xlane.f32.xlu1 %v676_v37 }
 0x2a0   : > { %v839_v38 = vpop.f32.mrb[6].mxu0 }
 0x2a1   : > { %v1342_v39 = vpop.f32.mrb[7].mxu0  ;;  %v843_v40 = vsel %vm312_vm2, %v839_v38, -inf }
 0x2a2   : > { %844 = vmax.xlane.f32.xlu0 %v843_v40 }
 0x2a4   : > { %v1006_v41 = vpop.f32.mrb[8].mxu0 }
 0x2a5   : > { %v1352_v42 = vpop.f32.mrb[9].mxu0  ;;  %v1010_v43 = vsel %vm312_vm2, %v1006_v41, -inf }
 0x2a6   : > { %1011 = vmax.xlane.f32.xlu0 %v1010_v43 }
 0x2af   : > { %334 = vrot.lane.b32.xlu1 %v1908_v15, %s1670_s7 }
 0x2b3   : > { %344 = vrot.lane.b32.xlu1 %v1908_v15, %s1671_s8 }
 0x2b8   : > { %v512_v44 = vpop.xlane.xlu0 %511 }
 0x2b9   : > { %v513_v45 = vsub.f32 %v506_v32, %v512_v44 }
 0x2bb   : > { %v514_v46 = vmul.f32 1.442695, %v513_v45 }
 0x2bc   : > { %324 = vrot.lane.b32.xlu0 %v1908_v15, %s1672_s26 }
 0x2bd   : > { %1468 = vpow2.f32 %v514_v46 }
 0x2c7   : > { %v1469_v47 = vpop.eup %1468 }
 0x2c8   : > { %1326 = vmatmul.mubr.msk.f32.vlgmr.msra.gmra.mrb[2].mxu1 %vm312_vm2, %v1469_v47  ;;  %v516_v6 = vsel %vm312_vm2, %v1469_v47, 0.0 }
 0x2c9   : > { %1335 = vmatprep.mubr.msk.f32.mxu1 %vm1664_vm0, %v1665_v1 }
 0x32b   : > { %v678_v48 = vpop.xlane.xlu1 %677 }
 0x32c   : > { %v679_v49 = vsub.f32 %v672_v35, %v678_v48 }
 0x32e   : > { %v680_v50 = vmul.f32 1.442695, %v679_v49 }
 0x32f   : > { %v335_v51 = vpop.permute.xlu1 %334  ;;  %v845_v52 = vpop.xlane.xlu0 %844 }
 0x330   : > { %1470 = vpow2.f32 %v680_v50  ;;  %338 = vst.msk [vmem:[#allocation3 + $0x10] sm:$0xff] %vm312_vm2, %v335_v51  ;;  %v846_v53 = vsub.f32 %v839_v38, %v845_v52 }
 0x332   : > { %v847_v54 = vmul.f32 1.442695, %v846_v53 }
 0x333   : > { %v345_v55 = vpop.permute.xlu1 %344  ;;  %v1012_v56 = vpop.xlane.xlu0 %1011 }
 0x334   : > { %1472 = vpow2.f32 %v847_v54  ;;  %348 = vst.msk [vmem:[#allocation3 + $0x18] sm:$0xff] %vm312_vm2, %v345_v55  ;;  %v1013_v57 = vsub.f32 %v1006_v41, %v1012_v56 }
 0x336   : > { %v1014_v58 = vmul.f32 1.442695, %v1013_v57 }
 0x337   : > { %v325_v59 = vpop.permute.xlu0 %324  ;;  %v765_v2 = vld [vmem:[#allocation3 + $0x10] sm:$0xff] }
 0x338   : > { %1474 = vpow2.f32 %v1014_v58  ;;  %328 = vst.msk [vmem:[#allocation3 + $0x8] sm:$0xff] %vm312_vm2, %v325_v59 }
 0x33a   : > { %v1471_v60 = vpop.eup %1470 }
 0x33b   : > { %v682_v61 = vsel %vm312_vm2, %v1471_v60, 0.0  ;;  %v932_v5 = vld [vmem:[#allocation3 + $0x18] sm:$0xff] }
 0x33c   : > { %683 = vadd.xlane.f32.xlu0 %v682_v61 }
 0x33e   : > { %v1473_v62 = vpop.eup %1472 }
 0x33f   : > { %v849_v63 = vsel %vm312_vm2, %v1473_v62, 0.0  ;;  %v598_v0 = vld [vmem:[#allocation3 + $0x8] sm:$0xff] }
 0x340   : > { %850 = vadd.xlane.f32.xlu1 %v849_v63  ;;  %1334 = vmatpush3.msra.mxu1 %v598_v0 }
 0x341   : > { %1336 = vmatmul.mubr.msk.f32.vlgmr.msra.gmra.mrb[4].mxu1 %vm312_vm2, %v1471_v60  ;;  %1343 = vmatprep.subr.mxu1 %v1665_v1 }
 0x342   : > { %v1475_v3 = vpop.eup %1474  ;;  %1344 = vmatpush3.msra.mxu1 %v765_v2  ;;  %1345 = vmatprep.mubr.msk.f32.mxu1 %vm1664_vm0, %v1665_v1 }
 0x343   : > { %v1016_v4 = vsel %vm312_vm2, %v1475_v3, 0.0  ;;  %1353 = vmatprep.subr.mxu1 %v1665_v1 }
 0x344   : > { %1017 = vadd.xlane.f32.xlu0 %v1016_v4 }
 0x345   : > { %1346 = vmatmul.mubr.msk.f32.vlgmr.msra.gmra.mrb[6].mxu1 %vm312_vm2, %v1473_v62 }
 0x346   : > { %1354 = vmatpush3.msra.mxu1 %v932_v5  ;;  %1355 = vmatprep.mubr.msk.f32.mxu1 %vm1664_vm0, %v1665_v1 }
 0x348   : > { %517 = vadd.xlane.f32.xlu0 %v516_v6 }
 0x349   : > { %1356 = vmatmul.mubr.msk.f32.vlgmr.msra.gmra.mrb[8].mxu1 %vm312_vm2, %v1475_v3 }
 0x39b   : > { %v588_v7 = vpop.f32.mrb[2].mxu1 }
 0x39c   : > { %v1327_v8 = vpop.f32.mrb[3].mxu1 }
 0x3c9   : > { %v684_v9 = vpop.xlane.xlu0 %683 }
 0x3cd   : > { %v851_v14 = vpop.xlane.xlu1 %850 }
 0x3d1   : > { %v1018_v10 = vpop.xlane.xlu0 %1017 }
 0x3d5   : > { %v518_v11 = vpop.xlane.xlu0 %517 }
 0x3d6   : > { %1476 = vrcp.f32 %v518_v11 }
 0x3d7   : > { %1478 = vrcp.f32 %v684_v9 }
 0x3d8   : > { %1480 = vrcp.f32 %v851_v14 }
 0x3d9   : > { %1482 = vrcp.f32 %v1018_v10 }
 0x3e0   : > { %v1477_v12 = vpop.eup %1476 }
 0x3e1   : > { %v593_v13 = vmul.f32 %v1477_v12, %v588_v7  ;;  %v1479_v1 = vpop.eup %1478 }
 0x3e2   : > { %v1481_v19 = vpop.eup %1480 }
 0x3e3   : > { %594 = vst.msk [vmem:[#allocation4] sm:$0xff] %vm312_vm2, %v593_v13  ;;  %v1483_v23 = vpop.eup %1482 }
 0x3ea   : > { %v1096_v33 = vld [vmem:[#allocation4] sm:$0xff] }
 0x414   : > { %v754_v15 = vpop.f32.mrb[4].mxu1 }
 0x415   : > { %v759_v16 = vmul.f32 %v1479_v1, %v754_v15  ;;  %v1337_v18 = vpop.f32.mrb[5].mxu1 }
 0x417   : > { %761 = vst.msk [vmem:[#allocation4 + $0x8] sm:$0xff] %vm312_vm2, %v759_v16 }
 0x418   : > { %v921_v20 = vpop.f32.mrb[6].mxu1 }
 0x419   : > { %v926_v21 = vmul.f32 %v1481_v19, %v921_v20  ;;  %v1347_v22 = vpop.f32.mrb[7].mxu1 }
 0x41b   : > { %928 = vst.msk [vmem:[#allocation4 + $0x10] sm:$0xff] %vm312_vm2, %v926_v21 }
 0x41c   : > { %v1088_v24 = vpop.f32.mrb[8].mxu1 }
 0x41d   : > { %v1093_v25 = vmul.f32 %v1483_v23, %v1088_v24  ;;  %v1357_v26 = vpop.f32.mrb[9].mxu1 }
 0x41e   : > { %v1097_v27 = vld [vmem:[#allocation4 + $0x8] sm:$0xff] }
 0x41f   : > { %1095 = vst.msk [vmem:[#allocation4 + $0x18] sm:$0xff] %vm312_vm2, %v1093_v25  ;;  %1101 = vrot.lane.b32.xlu1 %v1097_v27, %s1673_s29 }
 0x422   : > { %v1098_v28 = vld [vmem:[#allocation4 + $0x10] sm:$0xff] }
 0x423   : > { %1105 = vrot.lane.b32.xlu0 %v1098_v28, %s1674_s11 }
 0x426   : > { %v1099_v29 = vld [vmem:[#allocation4 + $0x18] sm:$0xff] }
 0x427   : > { %1109 = vrot.lane.b32.xlu1 %v1099_v29, %s1675_s30 }
 0x42b   : > { %1118 = vrot.lane.b32.xlu1 %v1914_v17, %s1669_s6  ;;  %s1576_s6 = scalar_lea.vmem %s1575_s10, 256 }
 0x42c   : > { %p1578_p5 = scmp.lt.s32.totalorder %s1576_s6, %s1570_s24 }
 0x42e   : > { %p1579_p9 = por %p1578_p5, %p1577_p3 }
 0x430   : > { %p1580_p11 = pnand %p1579_p9, %p1573_p10 }
 0x491   : > { %v1102_v30 = vpop.permute.xlu1 %1101 }
 0x492   : > { %v1112_v34 = vsel %vm312_vm2, %v1096_v33, %v1102_v30 }
 0x495   : > { %v1106_v31 = vpop.permute.xlu0 %1105 }
 0x496   : > { %v1114_v35 = vsel %vm1113_vm3, %v1112_v34, %v1106_v31 }
 0x499   : > { %v1110_v32 = vpop.permute.xlu1 %1109 }
 0x49a   : > { %v1116_v37 = vsel %vm1115_vm4, %v1114_v35, %v1110_v32 }
 0x49d   : > { %v1119_v36 = vpop.permute.xlu1 %1118 }
 0x49e   : > { %v1121_v38 = vadd.f32 %v1119_v36, %v1116_v37 }
 0x4a0   : > { %v1122_v39 = vmax.f32 %v1121_v38, 0.0 }
 0x4a2   : > { %1123 = vst.msk [vmem:[%s228_s5] sm:$0xff] %vm238_vm1, %v1122_v39 }
 0x4a3   : > { %1583 = shalt.err (!%p1580_p11)
}
 0x4a4   : > { %s1584_s9 = scalar_lea.hbm %s1981_s20, 128  ;;  %s1588_s26 = scalar_lea.hbm %s2034_s3, 256 }
 0x4a5   : > { %p1585_p0 = scmp.ne.s32.totalorder %s1981_s20, %s1584_s9  ;;  %p1589_p6 = scmp.lt.u32.totalorder %s1981_s20, %s2034_s3 }
 0x4a6   : > { %p1590_p7 = scmp.lt.u32.totalorder %s1588_s26, %s1584_s9  ;;  %p1592_p8 = scmp.lt.u32.totalorder %s1584_s9, %s1981_s20 }
 0x4a7   : > { %p1586_p4 = pnand %p1585_p0, %p2049_p12 }
 0x4a8   : > { %p1591_p2 = por %p1590_p7, %p1589_p6 }
 0x4a9   : > { %p1587_p13 = pneg %p1586_p4 }
 0x4aa   : > { %p1593_p1 = por %p1592_p8, %p1591_p2 }
 0x4ac   : > { %p1594_p10 = pnand %p1593_p1, %p1587_p13 }
 0x4ae   : > { %1597 = shalt.err (!%p1594_p10)
}
 0x4af   : > { %1380 = dma.vmem_to_hbm [thread:$0]  (%p2049_p12), %s1983_s21, 128, %s1981_s20, %s1125_s22  }
 0x4b0 PF: > { %s1151_s30 = sand.u32 1, %s1636_s12   ;;  %p2050_p3 = scmp.ne.s32.totalorder %s2042_s23, 0 }
 0x4b1   : > { %p2051_p5 = scmp.ge.s32.totalorder %s1656_s17, 2  ;;  %s1152_s4 = scalar_lea.sflag [#allocation7], %s1151_s30 }
 0x4b3   : > { %p1394_p9 = pnand %p2051_p5, %p2050_p3 }
 0x4b5   : > { %1631 = dma.done.wait (!%p1394_p9), %s1152_s4, 128  }
 0x4b6   : > { %1633 = vsyncadd (!%p1394_p9), %s1152_s4, 4294967168  ;;  %s20_s17 = sadd.s32 1, %s1656_s17   ;;  %s2052_s12 = smov %s1640_s13 }
 0x4b7   : > { %p17_p11 = scmp.ge.s32.totalorder %s20_s17, 4   ;;  %s2053_s13 = smov %s1644_s14 }
 0x4b8   : > { %s2054_s14 = smov %s1839_s18  ;;  %s2055_s15 = smov %s1652_s16 }
 0x4b9   : > { %s2056_s16 = smov %s2058_s19  ;;  %19 = sbr.rel (!%p17_p11) target bundleno = 7 (0x7), region = 105 }
 0x4c0   :  { %1157 = vsyncpa [#allocation6], 1 }
 0x4c1   :  { %1159 = vsyncpa [#allocation6 + $0x1], 1 }
 0x4c2   :  { %1160 = vsyncpa [#allocation9], 1 }
 0x4c3   :  { %1161 = vsyncpa [#allocation7], 1 }
 0x4c4   :  { %1163 = vsyncpa [#allocation7 + $0x1], 1 }

// kernel: tpu_custom_call.1
= control target key start
LH: loop header
LB: loop body
LE: loop exit
PB: predicated region body
PF: predicated region fallthrough
CT: control target
= control target key end

     0   :  { %8 = vsyncpa [#allocation6], 0  ;;  %s2031_s0 = inlined_call_operand.hbm [shape: f32[2,8,32], index: 0, kind: input, shape index: {}]   ;;  %s2032_s1 = inlined_call_operand.hbm [shape: f32[32,64], index: 1, kind: input, shape index: {}]   ;;  %s2033_s2 = inlined_call_operand.hbm [shape: f32[32,64], index: 2, kind: input, shape index: {}]   ;;  %s2034_s3 = inlined_call_operand.hbm [shape: f32[2,8,32], index: 3, kind: output, shape index: {}]  }
   0x1   :  { %10 = vsyncpa [#allocation6 + $0x1], 0 }
   0x2   :  { %11 = vsyncpa [#allocation9], 0 }
   0x3   :  { %12 = vsyncpa [#allocation7], 0 }
   0x4   :  { %14 = vsyncpa [#allocation7 + $0x1], 0  ;;  %s1697_s12 = smov 0   ;;  %s1699_s13 = smov 0  }
   0x5   :  { %s1701_s14 = smov 0   ;;  %s1703_s15 = smov 0  }
   0x6   :  { %s1705_s16 = smov 0   ;;  %s1707_s17 = smov 0  }
   0x7 LB: > { %s1239_s18 = sadd.s32 4294967295, %s1656_s17   ;;  %s1240_s19 = sadd.s32 4294967294, %s1656_s17   ;;  %s1656_s17 = sphi %s1707_s17, %s20_s17   ;;  %s1652_s16 = sphi %s1705_s16, %s2056_s16   ;;  %s1648_s15 = sphi %s1703_s15, %s2055_s15   ;;  %s1644_s14 = sphi %s1701_s14, %s2054_s14   ;;  %s1640_s13 = sphi %s1699_s13, %s2053_s13   ;;  %s1636_s12 = sphi %s1697_s12, %s2052_s12  }
   0x8   : > { %p52_p0 = scmp.ne.s32.totalorder %s1640_s13, %s1636_s12  ;;  %p1731_p1 = scmp.eq.s32.totalorder %s1239_s18, 0 }
   0x9   : > { %p1735_p2 = scmp.eq.s32.totalorder %s1239_s18, 1  ;;  %p126_p3 = scmp.eq.s32.totalorder %s1240_s19, 1 }
   0xa   : > { %s2039_s20 = scalar_select %p1731_p1, 1, 0 }
   0xb   : > { %p1741_p4 = por %p1731_p1, %p52_p0  ;;  %p1241_p5 = scmp.ge.s32.totalorder %s1656_s17, 1 }
   0xc   : > { %p1746_p6 = por %p126_p3, %p52_p0  ;;  %p133_p7 = scmp.lt.s32.totalorder %s1656_s17, 3 }
   0xd   : > { %s2041_s22 = scalar_select %p1741_p4, 1, 0 }
   0xe   : > { %s2042_s23 = scalar_select %p1746_p6, 1, 0 }
   0xf   : > { %p1751_p8 = pnand %p1241_p5, %p133_p7  ;;  %s1658_s25 = smov [#allocation8]  }
  0x10   : > { %s145_s26 = sshll.u32 %s1658_s25, 4  ;;  %s1659_s28 = smov [#allocation10]   ;;  %s1755_s26 = int_to_ptr.vmem [resolvable:$true] %s145_s26 }
  0x11   : > { %p1382_p9 = pneg %p1751_p8  ;;  %s158_s29 = sshll.u32 %s1659_s28, 4  ;;  %s1766_s29 = int_to_ptr.vmem [resolvable:$true] %s158_s29 }
  0x12   : > { %s1484_s5 = scalar_lea.hbm %s2032_s1, 512 }
  0x13   : > { %p1762_p11 = pnand %p1382_p9, %p1731_p1  ;;  %p1485_p12 = scmp.ne.s32.totalorder %s2032_s1, %s1484_s5 }
  0x14   : > { %p1491_p5 = scmp.lt.u32.totalorder %s1484_s5, %s2032_s1 }
  0x15   : > { %p1486_p13 = pneg %p1762_p11 }
  0x17   : > { %p1487_p0 = pnand %p1486_p13, %p1485_p12 }
  0x19   : > { %p1488_p3 = pneg %p1487_p0 }
  0x1b   : > { %p1493_p7 = pnand %p1491_p5, %p1488_p3 }
  0x1d   : > { %1496 = shalt.err (!%p1493_p7)
}
  0x1e   : > { %s1497_s10 = scalar_lea.vmem %s1755_s26, 512  ;;  %p1505_p1 = scmp.lt.s32.totalorder %s1755_s26, %s1755_s26 }
  0x1f   : > { %p1498_p9 = scmp.ne.s32.totalorder %s1755_s26, %s1497_s10  ;;  %p1506_p12 = scmp.lt.s32.totalorder %s1497_s10, %s1497_s10 }
  0x21   : > { %p1500_p10 = pnand %p1498_p9, %p1486_p13  ;;  %p1507_p0 = por %p1506_p12, %p1505_p1 }
  0x23   : > { %p1501_p6 = pneg %p1500_p10 }
  0x25   : > { %p1508_p4 = pnand %p1507_p0, %p1501_p6 }
  0x27   : > { %1511 = shalt.err (!%p1508_p4)
}
  0x28   : > { %s1660_s11 = smov 128   ;;  %s1661_s18 = smov 8  }
  0x29   : > { %1385 = dma.hbm_to_vmem [thread:$0]  (!%p1762_p11), %s2032_s1, 512, %s1755_s26, [#allocation9], %s1660_s11, %s1660_s11, %s1661_s18  }
  0x2a   : > { %s1512_s4 = scalar_lea.hbm %s2033_s2, 512 }
  0x2b   : > { %p1513_p1 = scmp.ne.s32.totalorder %s2033_s2, %s1512_s4  ;;  %p1519_p10 = scmp.lt.u32.totalorder %s1512_s4, %s2033_s2 }
  0x2d   : > { %p1515_p4 = pnand %p1513_p1, %p1486_p13 }
  0x2f   : > { %p1516_p6 = pneg %p1515_p4 }
  0x31   : > { %p1521_p3 = pnand %p1519_p10, %p1516_p6 }
  0x33   : > { %1524 = shalt.err (!%p1521_p3)
}
  0x34   : > { %s1525_s26 = scalar_lea.vmem %s1766_s29, 512  ;;  %p1533_p12 = scmp.lt.s32.totalorder %s1766_s29, %s1766_s29 }
  0x35   : > { %p1526_p5 = scmp.ne.s32.totalorder %s1766_s29, %s1525_s26  ;;  %p1534_p0 = scmp.lt.s32.totalorder %s1525_s26, %s1525_s26 }
  0x37   : > { %p1528_p7 = pnand %p1526_p5, %p1486_p13  ;;  %p1535_p1 = por %p1534_p0, %p1533_p12 }
  0x39   : > { %p1529_p9 = pneg %p1528_p7 }
  0x3b   : > { %p1536_p4 = pnand %p1535_p1, %p1529_p9 }
  0x3d   : > { %1539 = shalt.err (!%p1536_p4)
}
  0x3e   : > { %1388 = dma.hbm_to_vmem [thread:$0]  (!%p1762_p11), %s2033_s2, 512, %s1766_s29, [#allocation9], %s1660_s11, %s1660_s11, %s1661_s18  }
  0x3f   : > { %s32_s19 = sadd.s32 1, %s1652_s16  ;;  %s39_s25 = sadd.s32 1, %s1644_s14 }
  0x40   : > { %p34_p13 = scmp.ge.s32.totalorder %s32_s19, 2  ;;  %p46_p6 = scmp.ne.s32.totalorder %s1644_s14, %s1640_s13 }
  0x41   : > { %p47_p10 = scmp.eq.s32.totalorder %s1656_s17, 0  ;;  %p1399_p3 = scmp.lt.s32.totalorder %s1656_s17, 2 }
  0x42   : > { %s2058_s19 = smov (%p34_p13, %s32_s19), 0  ;;  %p1830_p7 = por %p1735_p2, %p46_p6 }
  0x43   : > { %p48_p5 = por %p47_p10, %p46_p6  ;;  %s36_s28 = ssub.s32 %s1652_s16, %s2058_s19 }
  0x44   : > { %s2045_s27 = scalar_select %p1830_p7, 1, 0 }
  0x45   : > { %s172_s30 = sand.u32 1, %s1644_s14   ;;  %p37_p9 = scmp.eq.s32.totalorder %s36_s28, 0 }
  0x46   : > { %s1245_s29 = sshll.u32 %s172_s30, 3  ;;  %s1246_s11 = sshll.u32 %s1652_s16, 7 }
  0x47   : > { %s1839_s18 = scalar_select %p37_p9, %s1644_s14, %s39_s25  }
  0x48   : > { %s1844_s6 = scalar_lea.hbm %s2031_s0, %s1246_s11  ;;  %s176_s21 = scalar_lea.vmem [#allocation5], %s1245_s29 }
  0x49   : > { %s183_s7 = sshll.u32 %s176_s21, 4  ;;  %p1848_p2 = pnand %p1399_p3, %p48_p5  ;;  %s1852_s7 = int_to_ptr.vmem [resolvable:$true] %s183_s7 }
  0x4a   : > { %s173_s26 = scalar_lea.sflag [#allocation6], %s172_s30  ;;  %s1540_s9 = scalar_lea.hbm %s1844_s6, 128 }
  0x4b   : > { %p1541_p11 = scmp.ne.s32.totalorder %s1844_s6, %s1540_s9  ;;  %p1542_p12 = pneg %p1848_p2 }
  0x4c   : > { %s1545_s28 = scalar_lea.hbm %s2031_s0, 256  ;;  %p1546_p4 = scmp.lt.u32.totalorder %s1844_s6, %s2031_s0 }
  0x4d   : > { %p1543_p0 = pnand %p1542_p12, %p1541_p11  ;;  %p1547_p13 = scmp.lt.u32.totalorder %s1545_s28, %s1540_s9 }
  0x4e   : > { %p1549_p10 = scmp.lt.u32.totalorder %s1540_s9, %s1844_s6 }
  0x4f   : > { %p1544_p1 = pneg %p1543_p0  ;;  %p1548_p6 = por %p1547_p13, %p1546_p4 }
  0x51   : > { %p1550_p3 = por %p1549_p10, %p1548_p6 }
  0x53   : > { %p1551_p5 = pnand %p1550_p3, %p1544_p1 }
  0x55   : > { %1554 = shalt.err (!%p1551_p5)
}
  0x56   : > { %s1555_s30 = scalar_lea.vmem %s1852_s7, 128  ;;  %s1662_s4 = smov [#allocation5]  }
  0x57   : > { %p1556_p9 = scmp.ne.s32.totalorder %s1852_s7, %s1555_s30  ;;  %s1560_s5 = sshll.u32 %s1662_s4, 4  ;;  %s1561_s5 = int_to_ptr.vmem [resolvable:$false] %s1560_s5 }
  0x58   : > { %s1562_s21 = scalar_lea.vmem %s1561_s5, 256  ;;  %p1563_p7 = scmp.lt.s32.totalorder %s1852_s7, %s1561_s5 }
  0x59   : > { %p1558_p11 = pnand %p1556_p9, %p1542_p12  ;;  %p1564_p4 = scmp.lt.s32.totalorder %s1562_s21, %s1555_s30 }
  0x5b   : > { %p1559_p0 = pneg %p1558_p11  ;;  %p1565_p13 = por %p1564_p4, %p1563_p7 }
  0x5d   : > { %p1566_p6 = pnand %p1565_p13, %p1559_p0 }
  0x5f   : > { %1569 = shalt.err (!%p1566_p6)
}
  0x60   : > { %1392 = dma.hbm_to_vmem [thread:$0]  (!%p1848_p2), %s1844_s6, 128, %s1852_s7, %s173_s26  }
  0x61   : > { %192 = sbr.rel (%p1751_p8) target bundleno = 1200 (0x4b0), region = 32  ;;  %s1882_s9 = sand.u32 (!%p1751_p8), 1, %s1640_s13  }
  0x62   : > { %s1248_s10 = sshll.u32 (!%p1751_p8), %s1882_s9, 3  ;;  %s195_s25 = scalar_lea.sflag (!%p1751_p8), [#allocation6], %s1882_s9 }
  0x63   : > { %s198_s28 = scalar_lea.vmem (!%p1751_p8), [#allocation5], %s1248_s10  ;;  %p2047_p7 = scmp.ne.s32.totalorder (!%p1751_p8), %s2041_s22, 0 }
  0x68   : > { %1623 = dma.done.wait (%p2047_p7), %s195_s25, 128  }
  0x69   : > { %1625 = vsyncadd (%p2047_p7), %s195_s25, 4294967168  ;;  %p2048_p2 = scmp.ne.s32.totalorder %s2039_s20, 0 }
  0x6b   : > { %1627 = dma.done.wait (%p2048_p2), [#allocation9], 1024  }
  0x6c   : > { %1629 = vsyncadd (%p2048_p2), [#allocation9], 4294966272  ;;  %v1663_v0 = vmov 0.0|0.0   ;;  %vm1664_vm0 = vmmov 0   ;;  %v1665_v1 = vmov 0.0   ;;  %v234_v2 = vld [vmem:[#allocation10] sm:$0xff] }
  0x6d   : > { %1358 = vmatprep.subr.bf16.mxu0 %v1663_v0  ;;  %1364 = vmatprep.subr.bf16.mxu1 %v1663_v0  ;;  %v235_v3 = vld [vmem:[#allocation10 + $0x8] sm:$0xff]  ;;  %v352_v4 = vld [vmem:[#allocation8] sm:$0xff]  ;;  %v236_v7 = vld [vmem:[#allocation10 + $0x10] sm:$0xff]  ;;  %vm238_vm1 = vcmask 261120   ;;  %vm312_vm2 = vcmask 64512   ;;  %s1666_s20 = smov 104  }
  0x6e   : > { %1304 = vmatprep.mubr.msk.f32.mxu0 %vm1664_vm0, %v1665_v1  ;;  %1315 = vmatprep.mubr.msk.f32.mxu1 %vm1664_vm0, %v1665_v1  ;;  %v1359_v5 = vpack.c.bf16 %v235_v3, %v234_v2  ;;  %v353_v6 = vld [vmem:[#allocation8 + $0x8] sm:$0xff]  ;;  %v237_v8 = vld [vmem:[#allocation10 + $0x18] sm:$0xff]  ;;  %v354_v10 = vld [vmem:[#allocation8 + $0x10] sm:$0xff]  ;;  %s1667_s22 = smov 120   ;;  %s1668_s24 = smov 112   ;;  %vm1113_vm3 = vcmask 130048  }
  0x6f   : > { %v1365_v9 = vpack.c.bf16 %v353_v6, %v352_v4  ;;  %v355_v11 = vld [vmem:[#allocation8 + $0x18] sm:$0xff]  ;;  %v1362_v12 = vpack.c.bf16 %v237_v8, %v236_v7  ;;  %s1669_s6 = smov 96   ;;  %s1670_s7 = smov 80   ;;  %vm1115_vm4 = vcmask 195584  }
  0x70   : > { %1360 = vmatpush3.bf16.msra.mxu0 %v1359_v5  ;;  %v1368_v13 = vpack.c.bf16 %v355_v11, %v354_v10  ;;  %v233_v14 = vld [vmem:[%s198_s28] sm:$0xff]  ;;  %s1671_s8 = smov 72   ;;  %s1672_s26 = smov 88  }
  0x71   : > { %1366 = vmatpush3.bf16.msra.mxu1 %v1365_v9  ;;  %1361 = vmatprep.subr.bf16.mxu0 %v1663_v0  ;;  %s1673_s29 = smov 8   ;;  %s1674_s11 = smov 16  }
  0x72   : > { %1367 = vmatprep.subr.bf16.mxu1 %v1663_v0  ;;  %s1675_s30 = smov 24   ;;  %s1267_s4 = sshll.u32 %s1648_s15, 7 }
  0x73   : > { %s228_s5 = scalar_lea.vmem [#allocation11], %s1248_s10  ;;  %p2049_p12 = scmp.ne.s32.totalorder %s2045_s27, 0 }
  0x74   : > { %1363 = vmatpush3.bf16.msra.mxu0 %v1362_v12  ;;  %s1139_s21 = sshll.u32 %s228_s5, 4  ;;  %s1676_s15 = smov [#allocation11]   ;;  %s1983_s21 = int_to_ptr.vmem [resolvable:$true] %s1139_s21 }
  0x75   : > { %1369 = vmatpush3.bf16.msra.mxu1 %v1368_v13  ;;  %1318 = vmatprep.subr.mxu0 %v1665_v1  ;;  %s1574_s10 = sshll.u32 %s1676_s15, 4  ;;  %s1575_s10 = int_to_ptr.vmem [resolvable:$false] %s1574_s10 }
  0x76   : > { %1323 = vmatprep.subr.mxu1 %v1665_v1  ;;  %p1577_p3 = scmp.lt.s32.totalorder %s1983_s21, %s1575_s10 }
  0x77   : > { %1305 = vmatmul.mubr.msk.f32.vlgmr.msra.gmra.mrb[0].mxu0 %vm238_vm1, %v233_v14 }
  0x78   : > { %1316 = vmatmul.mubr.msk.f32.vlgmr.msra.gmra.mrb[0].mxu1 %vm238_vm1, %v233_v14  ;;  %1320 = vmatprep.mubr.msk.f32.mxu0 %vm1664_vm0, %v1665_v1 }
  0x79   : > { %1325 = vmatprep.mubr.msk.f32.mxu1 %vm1664_vm0, %v1665_v1 }
 0x14a   : > { %v1908_v15 = vpop.f32.mrb[0].mxu0 }
 0x14b   : > { %313 = vst.msk [vmem:[#allocation2] sm:$0xff] %vm312_vm2, %v1908_v15  ;;  %339 = vrot.lane.b32.xlu1 %v1908_v15, %s1666_s20  ;;  %319 = vrot.lane.b32.xlu0 %v1908_v15, %s1667_s22  ;;  %v1306_v16 = vpop.f32.mrb[1].mxu0  ;;  %v1914_v17 = vpop.f32.mrb[0].mxu1 }
 0x14c   : > { %v430_v18 = vmul.f32 0.35355338, %v1914_v17  ;;  %v1317_v19 = vpop.f32.mrb[1].mxu1 }
 0x14f   : > { %599 = vrot.lane.b32.xlu1 %v430_v18, %s1667_s22  ;;  %329 = vrot.lane.b32.xlu0 %v1908_v15, %s1668_s24  ;;  %s1125_s22 = scalar_lea.sflag [#allocation7], %s1882_s9 }
 0x152   : > { %v431_v20 = vld [vmem:[#allocation2] sm:$0xff] }
 0x153   : > { %933 = vrot.lane.b32.xlu1 %v430_v18, %s1666_s20  ;;  %1319 = vmatpush3.xpose.msk.msra.mxu0 %vm312_vm2, %v431_v20  ;;  %s1981_s20 = scalar_lea.hbm %s2034_s3, %s1267_s4 }
 0x154   : > { %766 = vrot.lane.b32.xlu0 %v430_v18, %s1668_s24  ;;  %1328 = vmatprep.subr.mxu0 %v1665_v1  ;;  %s1570_s24 = scalar_lea.vmem %s1983_s21, 128 }
 0x155   : > { %p1571_p8 = scmp.ne.s32.totalorder %s1983_s21, %s1570_s24 }
 0x156   : > { %1321 = vmatmul.mubr.msk.f32.vlgmr.msra.gmra.mrb[2].mxu0 %vm312_vm2, %v430_v18 }
 0x157   : > { %315 = vrot.lane.b32.xlu1 %v1908_v15, %s1669_s6  ;;  %1330 = vmatprep.mubr.msk.f32.mxu0 %vm1664_vm0, %v1665_v1  ;;  %p1572_p1 = pnand %p1571_p8, %p2049_p12 }
 0x159   : > { %p1573_p10 = pneg %p1572_p1 }
 0x1bd   : > { %v340_v21 = vpop.permute.xlu1 %339  ;;  %v320_v22 = vpop.permute.xlu0 %319 }
 0x1be   : > { %343 = vst.msk [vmem:[#allocation2 + $0x18] sm:$0xff] %vm312_vm2, %v340_v21  ;;  %323 = vst.msk [vmem:[#allocation2 + $0x8] sm:$0xff] %vm312_vm2, %v320_v22 }
 0x1c1   : > { %v600_v23 = vpop.permute.xlu1 %599  ;;  %v330_v24 = vpop.permute.xlu0 %329 }
 0x1c2   : > { %333 = vst.msk [vmem:[#allocation2 + $0x10] sm:$0xff] %vm312_vm2, %v330_v24 }
 0x1c5   : > { %v934_v25 = vpop.permute.xlu1 %933  ;;  %v596_v26 = vld [vmem:[#allocation2 + $0x8] sm:$0xff]  ;;  %v930_v30 = vld [vmem:[#allocation2 + $0x18] sm:$0xff] }
 0x1c6   : > { %1329 = vmatpush3.xpose.msk.msra.mxu0 %vm312_vm2, %v596_v26  ;;  %v767_v29 = vpop.permute.xlu0 %766 }
 0x1c7   : > { %1338 = vmatprep.subr.mxu0 %v1665_v1 }
 0x1c9   : > { %v316_v27 = vpop.permute.xlu1 %315  ;;  %1331 = vmatmul.mubr.msk.f32.vlgmr.msra.gmra.mrb[4].mxu0 %vm312_vm2, %v600_v23  ;;  %v763_v28 = vld [vmem:[#allocation2 + $0x10] sm:$0xff] }
 0x1ca   : > { %318 = vst.msk [vmem:[#allocation3] sm:$0xff] %vm312_vm2, %v316_v27  ;;  %1339 = vmatpush3.xpose.msk.msra.mxu0 %vm312_vm2, %v763_v28  ;;  %1340 = vmatprep.mubr.msk.f32.mxu0 %vm1664_vm0, %v1665_v1 }
 0x1cb   : > { %1348 = vmatprep.subr.mxu0 %v1665_v1 }
 0x1cd   : > { %1341 = vmatmul.mubr.msk.f32.vlgmr.msra.gmra.mrb[6].mxu0 %vm312_vm2, %v767_v29 }
 0x1ce   : > { %1349 = vmatpush3.xpose.msk.msra.mxu0 %vm312_vm2, %v930_v30  ;;  %1350 = vmatprep.mubr.msk.f32.mxu0 %vm1664_vm0, %v1665_v1 }
 0x1d1   : > { %1351 = vmatmul.mubr.msk.f32.vlgmr.msra.gmra.mrb[8].mxu0 %vm312_vm2, %v934_v25  ;;  %v432_v31 = vld [vmem:[#allocation3] sm:$0xff] }
 0x1d2   : > { %1324 = vmatpush3.msra.mxu1 %v432_v31 }
 0x1d3   : > { %1333 = vmatprep.subr.mxu1 %v1665_v1 }
 0x229   : > { %v506_v32 = vpop.f32.mrb[2].mxu0 }
 0x22a   : > { %v1322_v33 = vpop.f32.mrb[3].mxu0  ;;  %v510_v34 = vsel %vm312_vm2, %v506_v32, -inf }
 0x22b   : > { %511 = vmax.xlane.f32.xlu0 %v510_v34 }
 0x29c   : > { %v672_v35 = vpop.f32.mrb[4].mxu0 }
 0x29d   : > { %v1332_v36 = vpop.f32.mrb[5].mxu0  ;;  %v676_v37 = vsel %vm312_vm2, %v672_v35, -inf }
 0x29e   : > { %677 = vmax.xlane.f32.xlu1 %v676_v37 }
 0x2a0   : > { %v839_v38 = vpop.f32.mrb[6].mxu0 }
 0x2a1   : > { %v1342_v39 = vpop.f32.mrb[7].mxu0  ;;  %v843_v40 = vsel %vm312_vm2, %v839_v38, -inf }
 0x2a2   : > { %844 = vmax.xlane.f32.xlu0 %v843_v40 }
 0x2a4   : > { %v1006_v41 = vpop.f32.mrb[8].mxu0 }
 0x2a5   : > { %v1352_v42 = vpop.f32.mrb[9].mxu0  ;;  %v1010_v43 = vsel %vm312_vm2, %v1006_v41, -inf }
 0x2a6   : > { %1011 = vmax.xlane.f32.xlu0 %v1010_v43 }
 0x2af   : > { %334 = vrot.lane.b32.xlu1 %v1908_v15, %s1670_s7 }
 0x2b3   : > { %344 = vrot.lane.b32.xlu1 %v1908_v15, %s1671_s8 }
 0x2b8   : > { %v512_v44 = vpop.xlane.xlu0 %511 }
 0x2b9   : > { %v513_v45 = vsub.f32 %v506_v32, %v512_v44 }
 0x2bb   : > { %v514_v46 = vmul.f32 1.442695, %v513_v45 }
 0x2bc   : > { %324 = vrot.lane.b32.xlu0 %v1908_v15, %s1672_s26 }
 0x2bd   : > { %1468 = vpow2.f32 %v514_v46 }
 0x2c7   : > { %v1469_v47 = vpop.eup %1468 }
 0x2c8   : > { %1326 = vmatmul.mubr.msk.f32.vlgmr.msra.gmra.mrb[2].mxu1 %vm312_vm2, %v1469_v47  ;;  %v516_v6 = vsel %vm312_vm2, %v1469_v47, 0.0 }
 0x2c9   : > { %1335 = vmatprep.mubr.msk.f32.mxu1 %vm1664_vm0, %v1665_v1 }
 0x32b   : > { %v678_v48 = vpop.xlane.xlu1 %677 }
 0x32c   : > { %v679_v49 = vsub.f32 %v672_v35, %v678_v48 }
 0x32e   : > { %v680_v50 = vmul.f32 1.442695, %v679_v49 }
 0x32f   : > { %v335_v51 = vpop.permute.xlu1 %334  ;;  %v845_v52 = vpop.xlane.xlu0 %844 }
 0x330   : > { %1470 = vpow2.f32 %v680_v50  ;;  %338 = vst.msk [vmem:[#allocation3 + $0x10] sm:$0xff] %vm312_vm2, %v335_v51  ;;  %v846_v53 = vsub.f32 %v839_v38, %v845_v52 }
 0x332   : > { %v847_v54 = vmul.f32 1.442695, %v846_v53 }
 0x333   : > { %v345_v55 = vpop.permute.xlu1 %344  ;;  %v1012_v56 = vpop.xlane.xlu0 %1011 }
 0x334   : > { %1472 = vpow2.f32 %v847_v54  ;;  %348 = vst.msk [vmem:[#allocation3 + $0x18] sm:$0xff] %vm312_vm2, %v345_v55  ;;  %v1013_v57 = vsub.f32 %v1006_v41, %v1012_v56 }
 0x336   : > { %v1014_v58 = vmul.f32 1.442695, %v1013_v57 }
 0x337   : > { %v325_v59 = vpop.permute.xlu0 %324  ;;  %v765_v2 = vld [vmem:[#allocation3 + $0x10] sm:$0xff] }
 0x338   : > { %1474 = vpow2.f32 %v1014_v58  ;;  %328 = vst.msk [vmem:[#allocation3 + $0x8] sm:$0xff] %vm312_vm2, %v325_v59 }
 0x33a   : > { %v1471_v60 = vpop.eup %1470 }
 0x33b   : > { %v682_v61 = vsel %vm312_vm2, %v1471_v60, 0.0  ;;  %v932_v5 = vld [vmem:[#allocation3 + $0x18] sm:$0xff] }
 0x33c   : > { %683 = vadd.xlane.f32.xlu0 %v682_v61 }
 0x33e   : > { %v1473_v62 = vpop.eup %1472 }
 0x33f   : > { %v849_v63 = vsel %vm312_vm2, %v1473_v62, 0.0  ;;  %v598_v0 = vld [vmem:[#allocation3 + $0x8] sm:$0xff] }
 0x340   : > { %850 = vadd.xlane.f32.xlu1 %v849_v63  ;;  %1334 = vmatpush3.msra.mxu1 %v598_v0 }
 0x341   : > { %1336 = vmatmul.mubr.msk.f32.vlgmr.msra.gmra.mrb[4].mxu1 %vm312_vm2, %v1471_v60  ;;  %1343 = vmatprep.subr.mxu1 %v1665_v1 }
 0x342   : > { %v1475_v3 = vpop.eup %1474  ;;  %1344 = vmatpush3.msra.mxu1 %v765_v2  ;;  %1345 = vmatprep.mubr.msk.f32.mxu1 %vm1664_vm0, %v1665_v1 }
 0x343   : > { %v1016_v4 = vsel %vm312_vm2, %v1475_v3, 0.0  ;;  %1353 = vmatprep.subr.mxu1 %v1665_v1 }
 0x344   : > { %1017 = vadd.xlane.f32.xlu0 %v1016_v4 }
 0x345   : > { %1346 = vmatmul.mubr.msk.f32.vlgmr.msra.gmra.mrb[6].mxu1 %vm312_vm2, %v1473_v62 }
 0x346   : > { %1354 = vmatpush3.msra.mxu1 %v932_v5  ;;  %1355 = vmatprep.mubr.msk.f32.mxu1 %vm1664_vm0, %v1665_v1 }
 0x348   : > { %517 = vadd.xlane.f32.xlu0 %v516_v6 }
 0x349   : > { %1356 = vmatmul.mubr.msk.f32.vlgmr.msra.gmra.mrb[8].mxu1 %vm312_vm2, %v1475_v3 }
 0x39b   : > { %v588_v7 = vpop.f32.mrb[2].mxu1 }
 0x39c   : > { %v1327_v8 = vpop.f32.mrb[3].mxu1 }
 0x3c9   : > { %v684_v9 = vpop.xlane.xlu0 %683 }
 0x3cd   : > { %v851_v14 = vpop.xlane.xlu1 %850 }
 0x3d1   : > { %v1018_v10 = vpop.xlane.xlu0 %1017 }
 0x3d5   : > { %v518_v11 = vpop.xlane.xlu0 %517 }
 0x3d6   : > { %1476 = vrcp.f32 %v518_v11 }
 0x3d7   : > { %1478 = vrcp.f32 %v684_v9 }
 0x3d8   : > { %1480 = vrcp.f32 %v851_v14 }
 0x3d9   : > { %1482 = vrcp.f32 %v1018_v10 }
 0x3e0   : > { %v1477_v12 = vpop.eup %1476 }
 0x3e1   : > { %v593_v13 = vmul.f32 %v1477_v12, %v588_v7  ;;  %v1479_v1 = vpop.eup %1478 }
 0x3e2   : > { %v1481_v19 = vpop.eup %1480 }
 0x3e3   : > { %594 = vst.msk [vmem:[#allocation4] sm:$0xff] %vm312_vm2, %v593_v13  ;;  %v1483_v23 = vpop.eup %1482 }
 0x3ea   : > { %v1096_v33 = vld [vmem:[#allocation4] sm:$0xff] }
 0x414   : > { %v754_v15 = vpop.f32.mrb[4].mxu1 }
 0x415   : > { %v759_v16 = vmul.f32 %v1479_v1, %v754_v15  ;;  %v1337_v18 = vpop.f32.mrb[5].mxu1 }
 0x417   : > { %761 = vst.msk [vmem:[#allocation4 + $0x8] sm:$0xff] %vm312_vm2, %v759_v16 }
 0x418   : > { %v921_v20 = vpop.f32.mrb[6].mxu1 }
 0x419   : > { %v926_v21 = vmul.f32 %v1481_v19, %v921_v20  ;;  %v1347_v22 = vpop.f32.mrb[7].mxu1 }
 0x41b   : > { %928 = vst.msk [vmem:[#allocation4 + $0x10] sm:$0xff] %vm312_vm2, %v926_v21 }
 0x41c   : > { %v1088_v24 = vpop.f32.mrb[8].mxu1 }
 0x41d   : > { %v1093_v25 = vmul.f32 %v1483_v23, %v1088_v24  ;;  %v1357_v26 = vpop.f32.mrb[9].mxu1 }
 0x41e   : > { %v1097_v27 = vld [vmem:[#allocation4 + $0x8] sm:$0xff] }
 0x41f   : > { %1095 = vst.msk [vmem:[#allocation4 + $0x18] sm:$0xff] %vm312_vm2, %v1093_v25  ;;  %1101 = vrot.lane.b32.xlu1 %v1097_v27, %s1673_s29 }
 0x422   : > { %v1098_v28 = vld [vmem:[#allocation4 + $0x10] sm:$0xff] }
 0x423   : > { %1105 = vrot.lane.b32.xlu0 %v1098_v28, %s1674_s11 }
 0x426   : > { %v1099_v29 = vld [vmem:[#allocation4 + $0x18] sm:$0xff] }
 0x427   : > { %1109 = vrot.lane.b32.xlu1 %v1099_v29, %s1675_s30 }
 0x42b   : > { %1118 = vrot.lane.b32.xlu1 %v1914_v17, %s1669_s6  ;;  %s1576_s6 = scalar_lea.vmem %s1575_s10, 256 }
 0x42c   : > { %p1578_p5 = scmp.lt.s32.totalorder %s1576_s6, %s1570_s24 }
 0x42e   : > { %p1579_p9 = por %p1578_p5, %p1577_p3 }
 0x430   : > { %p1580_p11 = pnand %p1579_p9, %p1573_p10 }
 0x491   : > { %v1102_v30 = vpop.permute.xlu1 %1101 }
 0x492   : > { %v1112_v34 = vsel %vm312_vm2, %v1096_v33, %v1102_v30 }
 0x495   : > { %v1106_v31 = vpop.permute.xlu0 %1105 }
 0x496   : > { %v1114_v35 = vsel %vm1113_vm3, %v1112_v34, %v1106_v31 }
 0x499   : > { %v1110_v32 = vpop.permute.xlu1 %1109 }
 0x49a   : > { %v1116_v37 = vsel %vm1115_vm4, %v1114_v35, %v1110_v32 }
 0x49d   : > { %v1119_v36 = vpop.permute.xlu1 %1118 }
 0x49e   : > { %v1121_v38 = vadd.f32 %v1119_v36, %v1116_v37 }
 0x4a0   : > { %v1122_v39 = vmax.f32 %v1121_v38, 0.0 }
 0x4a2   : > { %1123 = vst.msk [vmem:[%s228_s5] sm:$0xff] %vm238_vm1, %v1122_v39 }
 0x4a3   : > { %1583 = shalt.err (!%p1580_p11)
}
 0x4a4   : > { %s1584_s9 = scalar_lea.hbm %s1981_s20, 128  ;;  %s1588_s26 = scalar_lea.hbm %s2034_s3, 256 }
 0x4a5   : > { %p1585_p0 = scmp.ne.s32.totalorder %s1981_s20, %s1584_s9  ;;  %p1589_p6 = scmp.lt.u32.totalorder %s1981_s20, %s2034_s3 }
 0x4a6   : > { %p1590_p7 = scmp.lt.u32.totalorder %s1588_s26, %s1584_s9  ;;  %p1592_p8 = scmp.lt.u32.totalorder %s1584_s9, %s1981_s20 }
 0x4a7   : > { %p1586_p4 = pnand %p1585_p0, %p2049_p12 }
 0x4a8   : > { %p1591_p2 = por %p1590_p7, %p1589_p6 }
 0x4a9   : > { %p1587_p13 = pneg %p1586_p4 }
 0x4aa   : > { %p1593_p1 = por %p1592_p8, %p1591_p2 }
 0x4ac   : > { %p1594_p10 = pnand %p1593_p1, %p1587_p13 }
 0x4ae   : > { %1597 = shalt.err (!%p1594_p10)
}
 0x4af   : > { %1380 = dma.vmem_to_hbm [thread:$0]  (%p2049_p12), %s1983_s21, 128, %s1981_s20, %s1125_s22  }
 0x4b0 PF: > { %s1151_s30 = sand.u32 1, %s1636_s12   ;;  %p2050_p3 = scmp.ne.s32.totalorder %s2042_s23, 0 }
 0x4b1   : > { %p2051_p5 = scmp.ge.s32.totalorder %s1656_s17, 2  ;;  %s1152_s4 = scalar_lea.sflag [#allocation7], %s1151_s30 }
 0x4b3   : > { %p1394_p9 = pnand %p2051_p5, %p2050_p3 }
 0x4b5   : > { %1631 = dma.done.wait (!%p1394_p9), %s1152_s4, 128  }
 0x4b6   : > { %1633 = vsyncadd (!%p1394_p9), %s1152_s4, 4294967168  ;;  %s20_s17 = sadd.s32 1, %s1656_s17   ;;  %s2052_s12 = smov %s1640_s13 }
 0x4b7   : > { %p17_p11 = scmp.ge.s32.totalorder %s20_s17, 4   ;;  %s2053_s13 = smov %s1644_s14 }
 0x4b8   : > { %s2054_s14 = smov %s1839_s18  ;;  %s2055_s15 = smov %s1652_s16 }
 0x4b9   : > { %s2056_s16 = smov %s2058_s19  ;;  %19 = sbr.rel (!%p17_p11) target bundleno = 7 (0x7), region = 105 }
 0x4c0   :  { %1157 = vsyncpa [#allocation6], 1 }
 0x4c1   :  { %1159 = vsyncpa [#allocation6 + $0x1], 1 }
 0x4c2   :  { %1160 = vsyncpa [#allocation9], 1 }
 0x4c3   :  { %1161 = vsyncpa [#allocation7], 1 }
 0x4c4   :  { %1163 = vsyncpa [#allocation7 + $0x1], 1 }

</bundles_post_ra>
